<compile_context>
chip_gen: v5e
topology: v5e:2x2
jax: 0.10.0
libtpu: 0.0.40
codegen_flags: <defaults>
</compile_context>

<pallas_src>
import functools

import jax
import jax.numpy as jnp
from jax import lax
from jax.experimental import pallas as pl
from jax.experimental.pallas import tpu as pltpu

IN_FEATURES = 1 * 32 * 64   # 2048, fixed by the module
OUT_CLASSES = 100
LANE = 128
SUBLANE = 8
OUT_PAD = 128               # lane-dense padded logits width (>= OUT_CLASSES)
NEG_PAD = -1e30             # pad-lane bias -> exp() underflows to exactly 0


def _round_up(n, m):
    return ((n + m - 1) // m) * m


def _mlp_kernel(x_ref, w1_ref, b1_ref, w2_ref, b2_ref, o_ref, acc_ref, *,
                activation):
    """Grid = (batch tiles, hidden chunks); logits accumulate in acc_ref."""
    k = pl.program_id(1)

    @pl.when(k == 0)
    def _():
        acc_ref[...] = jnp.zeros_like(acc_ref)

    # ----- fc1 chunk: (TB, 2048) @ (2048, TH) on the MXU, f32 accumulation --
    h = jnp.dot(x_ref[...], w1_ref[...], preferred_element_type=jnp.float32)
    h = h + b1_ref[...]                      # (1, TH) broadcasts over TB, f32

    # ----- activation (f32) -----
    if activation == "relu":
        h = jnp.maximum(h, 0.0)
    elif activation == "sigmoid":
        h = jax.nn.sigmoid(h)
    elif activation == "tanh":
        h = jnp.tanh(h)
    # any other string: identity, matching the PyTorch module

    # ----- fc2 chunk: (TB, TH) @ (TH, 128), accumulated over hidden chunks --
    w2 = w2_ref[...]
    acc_ref[...] += jnp.dot(h.astype(w2.dtype), w2,
                            preferred_element_type=jnp.float32)

    @pl.when(k == pl.num_programs(1) - 1)
    def _():
        # b2 pad lanes are pre-filled with -1e30 -> no in-kernel class mask.
        logits = acc_ref[...] + b2_ref[...]            # (TB, 128), f32
        m = jnp.max(logits, axis=-1, keepdims=True)
        shifted = logits - m
        lse = jnp.log(jnp.sum(jnp.exp(shifted), axis=-1, keepdims=True))
        o_ref[...] = shifted - lse


def two_layer_net_forward(x_nchw, w1, b1, w2, b2, activation="relu", *,
                          block_b=512, use_bf16_matmul=True):
    """x_nchw: (B, 1, 32, 64).  Returns (B, 100) log-probs (f32).

    Weights are stored transposed w.r.t. nn.Linear: w1 (2048, H), w2 (H, 100),
    so the kernel computes x @ W1 + b1 and h @ W2 + b2 directly on the MXU.
    With use_bf16_matmul=True (default) x/W1/W2 are cast to bf16 in the
    wrapper; accumulation, biases, activation and log_softmax stay f32.
    Set use_bf16_matmul=False for exact f32 semantics.
    """
    B = x_nchw.shape[0]
    hidden = w1.shape[1]
    assert w1.shape[0] == IN_FEATURES, w1.shape
    assert w2.shape == (hidden, OUT_CLASSES), w2.shape

    mm_dtype = jnp.bfloat16 if use_bf16_matmul else jnp.float32
    mm_bytes = 2 if use_bf16_matmul else 4

    x = x_nchw.reshape(B, -1).astype(mm_dtype)            # (B, 2048)
    w1 = w1.astype(mm_dtype)
    w2 = w2.astype(mm_dtype)
    b1 = b1.reshape(1, -1).astype(jnp.float32)
    b2 = b2.reshape(1, -1).astype(jnp.float32)

    # ---- batch tiling (keep >= 2 grid steps when B allows: v7x megacore) ---
    tb = max(SUBLANE, min(block_b, _round_up(B, SUBLANE)))
    tb = _round_up(tb, SUBLANE)
    if B > SUBLANE and _round_up(B, SUBLANE) // tb < 2:
        tb = max(SUBLANE, _round_up(_round_up(B, SUBLANE) // 2, SUBLANE))
    b_pad = _round_up(B, tb)
    if b_pad != B:
        x = jnp.pad(x, ((0, b_pad - B), (0, 0)))
    b_steps = b_pad // tb

    # ---- VMEM planning (generation-aware cap, single-buffered weights) -----
    try:
        vmem_cap = int(pltpu.get_tpu_info().vmem_capacity_bytes)
    except Exception:
        vmem_cap = 64 << 20                  # conservative: v7x per-core VMEM
    usable = max(vmem_cap - (8 << 20), 24 << 20)   # leave compiler headroom

    f32 = 4
    fixed = (2 * tb * IN_FEATURES * mm_bytes       # x tiles  (double-buffered)
             + 2 * tb * OUT_PAD * f32              # out tiles (double-buffered)
             + tb * OUT_PAD * f32)                 # logits accumulator scratch
    weight_budget = usable - fixed - (2 << 20)

    h_pad = _round_up(hidden, LANE)
    resident_2buf = 2 * ((IN_FEATURES + OUT_PAD) * h_pad * mm_bytes
                         + (h_pad + OUT_PAD) * f32)
    if resident_2buf <= weight_budget:
        th, weights_resident = h_pad, True         # weights fully VMEM-resident
    else:
        # Stream W1/W2 in hidden chunks (double-buffered) and accumulate
        # fc2 logits in the VMEM scratch instead.
        per_128 = 2 * ((IN_FEATURES + OUT_PAD) * LANE * mm_bytes + LANE * f32)
        th = LANE * max(1, int(weight_budget // per_128))
        h_pad = _round_up(hidden, th)
        weights_resident = False
    h_steps = h_pad // th

    # ---- lane-dense padding (pads are numerically inert) -------------------
    if h_pad != hidden:
        w1 = jnp.pad(w1, ((0, 0), (0, h_pad - hidden)))
        b1 = jnp.pad(b1, ((0, 0), (0, h_pad - hidden)))
        w2 = jnp.pad(w2, ((0, h_pad - hidden), (0, 0)))   # zero rows -> no effect
    if OUT_PAD != OUT_CLASSES:
        w2 = jnp.pad(w2, ((0, 0), (0, OUT_PAD - OUT_CLASSES)))
        b2 = jnp.pad(b2, ((0, 0), (0, OUT_PAD - OUT_CLASSES)),
                     constant_values=NEG_PAD)             # pad logits == -1e30

    kernel = functools.partial(_mlp_kernel, activation=activation)

    def run(single_buffer_weights):
        w_kw = ({"pipeline_mode": pl.Buffered(1)}
                if single_buffer_weights else {})
        w_bufs = 1 if single_buffer_weights else 2
        need = (fixed
                + w_bufs * (IN_FEATURES * th + th * OUT_PAD) * mm_bytes
                + w_bufs * (th + OUT_PAD) * f32)
        vmem_limit = int(min(max(need + (4 << 20), 32 << 20), usable))
        grid_spec = pltpu.PrefetchScalarGridSpec(
            num_scalar_prefetch=0,
            grid=(b_steps, h_steps),
            in_specs=[
                pl.BlockSpec((tb, IN_FEATURES), lambda i, k: (i, 0)),       # x
                pl.BlockSpec((IN_FEATURES, th), lambda i, k: (0, k), **w_kw),  # W1
                pl.BlockSpec((1, th), lambda i, k: (0, k), **w_kw),            # b1
                pl.BlockSpec((th, OUT_PAD), lambda i, k: (k, 0), **w_kw),      # W2
                pl.BlockSpec((1, OUT_PAD), lambda i, k: (0, 0), **w_kw),       # b2
            ],
            out_specs=pl.BlockSpec((tb, OUT_PAD), lambda i, k: (i, 0)),
            scratch_shapes=[pltpu.VMEM((tb, OUT_PAD), jnp.float32)],
        )
        return pl.pallas_call(
            kernel,
            out_shape=jax.ShapeDtypeStruct((b_pad, OUT_PAD), jnp.float32),
            grid_spec=grid_spec,
            compiler_params=pltpu.CompilerParams(
                dimension_semantics=("parallel", "arbitrary"),
                vmem_limit_bytes=vmem_limit,
            ),
        )(x, w1, b1, w2, b2)

    if weights_resident:
        try:
            # Constant-index weight/bias blocks: single-buffer them (their
            # block index never changes, a second pipeline buffer is waste).
            out = jax.block_until_ready(run(True))
        except Exception:
            # This jax build rejects Buffered(1) -> default double-buffering.
            out = run(False)
    else:
        out = run(False)

    return out[:B, :OUT_CLASSES]


def init_params(key, hidden_size):
    """Deterministic init matching nn.Linear's U(-1/sqrt(fan_in), 1/sqrt(fan_in))."""
    k1, k2, k3, k4 = jax.random.split(key, 4)
    bound1 = 1.0 / (IN_FEATURES ** 0.5)
    bound2 = 1.0 / (hidden_size ** 0.5)
    w1 = jax.random.uniform(k1, (IN_FEATURES, hidden_size), jnp.float32,
                            -bound1, bound1)
    b1 = jax.random.uniform(k2, (1, hidden_size), jnp.float32, -bound1, bound1)
    w2 = jax.random.uniform(k3, (hidden_size, OUT_CLASSES), jnp.float32,
                            -bound2, bound2)
    b2 = jax.random.uniform(k4, (1, OUT_CLASSES), jnp.float32, -bound2, bound2)
    return w1, b1, w2, b2


if __name__ == "__main__":
    key = jax.random.PRNGKey(0)
    kx, kp = jax.random.split(key)

    batch = 2
    hidden_size = 32
    activation = "relu"

    x = jax.random.normal(kx, (batch, 1, 32, 64), jnp.float32)   # NCHW
    w1, b1, w2, b2 = init_params(kp, hidden_size)

    # Default path: bf16 matmul inputs, f32 accumulation / bias / softmax.
    out = jax.block_until_ready(
        two_layer_net_forward(x, w1, b1, w2, b2, activation=activation))
    assert out.shape == (batch, OUT_CLASSES)
    assert jnp.allclose(jnp.sum(jnp.exp(out), axis=1), 1.0, atol=1e-3)

    # Exact-f32 path.
    out_f32 = jax.block_until_ready(
        two_layer_net_forward(x, w1, b1, w2, b2, activation=activation,
                              use_bf16_matmul=False))

    xf = x.reshape(batch, -1)

    # f32 reference (highest precision) for the f32 path.
    ref = jnp.dot(xf, w1, precision=lax.Precision.HIGHEST) + b1
    ref = jnp.maximum(ref, 0.0)
    ref = jnp.dot(ref, w2, precision=lax.Precision.HIGHEST) + b2
    ref = jax.nn.log_softmax(ref, axis=-1)
    assert jnp.allclose(out_f32, ref, atol=1e-3, rtol=1e-3)

    # bf16-cast reference (f32 accumulation) for the default path.
    bf = jnp.bfloat16
    ref_bf = jnp.dot(xf.astype(bf), w1.astype(bf),
                     preferred_element_type=jnp.float32) + b1
    ref_bf = jnp.maximum(ref_bf, 0.0)
    ref_bf = jnp.dot(ref_bf.astype(bf), w2.astype(bf),
                     preferred_element_type=jnp.float32) + b2
    ref_bf = jax.nn.log_softmax(ref_bf, axis=-1)
    assert jnp.allclose(out, ref_bf, atol=5e-3, rtol=5e-3)

    print("KERNEL_OK")
</pallas_src>

<mosaic_0001>
module attributes {stable_mosaic.version = 11 : i64} {
  func.func @_mlp_kernel(%arg0: i32, %arg1: i32, %arg2: memref<8x2048xbf16, #tpu.memory_space<vmem>>, %arg3: memref<2048x128xbf16, #tpu.memory_space<vmem>>, %arg4: memref<1x128xf32, #tpu.memory_space<vmem>>, %arg5: memref<128x128xbf16, #tpu.memory_space<vmem>>, %arg6: memref<1x128xf32, #tpu.memory_space<vmem>>, %arg7: memref<8x128xf32, #tpu.memory_space<vmem>>, %arg8: memref<8x128xf32, #tpu.memory_space<vmem>>) attributes {dimension_semantics = [#tpu.dimension_semantics<parallel>, #tpu.dimension_semantics<arbitrary>], iteration_bounds = array<i64: 1, 1>, scalar_prefetch = 0 : i64, scratch_operands = 1 : i64, tpu.core_type = #tpu.core_type<tc>, window_params = [{transform_indices = @transform_0, window_bounds = array<i64: 8, 2048>}, {pipeline_mode = #tpu.pipeline_mode<synchronous>, transform_indices = @transform_1, window_bounds = array<i64: 2048, 128>}, {pipeline_mode = #tpu.pipeline_mode<synchronous>, transform_indices = @transform_2, window_bounds = array<i64: 1, 128>}, {pipeline_mode = #tpu.pipeline_mode<synchronous>, transform_indices = @transform_3, window_bounds = array<i64: 128, 128>}, {pipeline_mode = #tpu.pipeline_mode<synchronous>, transform_indices = @transform_4, window_bounds = array<i64: 1, 128>}, {transform_indices = @transform_5, window_bounds = array<i64: 8, 128>}]} {
    %c0_i32 = arith.constant 0 : i32
    %0 = arith.cmpi eq, %arg1, %c0_i32 : i32
    %1 = arith.extui %0 : i1 to i32
    %c0_i32_0 = arith.constant 0 : i32
    %2 = arith.cmpi ne, %1, %c0_i32_0 : i32
    scf.if %2 {
      %cst_16 = arith.constant 0.000000e+00 : f32
      %20 = vector.broadcast %cst_16 : f32 to vector<8x128xf32>
      %c0_17 = arith.constant 0 : index
      %c0_18 = arith.constant 0 : index
      %21 = vector.load %arg8[%c0_17, %c0_18] : memref<8x128xf32, #tpu.memory_space<vmem>>, vector<8x128xf32>
      tpu.vector_store %arg8[%c0_17, %c0_18], %20 {strides = array<i32>} : memref<8x128xf32, #tpu.memory_space<vmem>>, vector<8x128xf32>,
    } else {
    }
    %c0 = arith.constant 0 : index
    %c0_1 = arith.constant 0 : index
    %3 = vector.load %arg2[%c0, %c0_1] : memref<8x2048xbf16, #tpu.memory_space<vmem>>, vector<8x2048xbf16>
    %c0_2 = arith.constant 0 : index
    %c0_3 = arith.constant 0 : index
    %4 = vector.load %arg3[%c0_2, %c0_3] : memref<2048x128xbf16, #tpu.memory_space<vmem>>, vector<2048x128xbf16>
    %cst = arith.constant dense<0.000000e+00> : vector<8x128xf32>
    %5 = tpu.matmul %3, %4, %cst {dimension_numbers = #tpu.dot_dimension_numbers<[1], [0], [0], [1], [0, 0, 1, 1], [], []>} : vector<8x2048xbf16>, vector<2048x128xbf16>, vector<8x128xf32> -> vector<8x128xf32>
    %c0_4 = arith.constant 0 : index
    %c0_5 = arith.constant 0 : index
    %6 = vector.load %arg4[%c0_4, %c0_5] : memref<1x128xf32, #tpu.memory_space<vmem>>, vector<1x128xf32>
    %7 = vector.broadcast %6 : vector<1x128xf32> to vector<8x128xf32>
    %8 = arith.addf %5, %7 : vector<8x128xf32>
    %cst_6 = arith.constant 0.000000e+00 : f32
    %9 = vector.broadcast %cst_6 : f32 to vector<8x128xf32>
    %10 = arith.maximumf %8, %9 : vector<8x128xf32>
    %c0_7 = arith.constant 0 : index
    %c0_8 = arith.constant 0 : index
    %11 = vector.load %arg5[%c0_7, %c0_8] : memref<128x128xbf16, #tpu.memory_space<vmem>>, vector<128x128xbf16>
    %c0_9 = arith.constant 0 : index
    %c0_10 = arith.constant 0 : index
    %12 = vector.load %arg8[%c0_9, %c0_10] : memref<8x128xf32, #tpu.memory_space<vmem>>, vector<8x128xf32>
    %13 = arith.truncf %10 : vector<8x128xf32> to vector<8x128xbf16>
    %cst_11 = arith.constant dense<0.000000e+00> : vector<8x128xf32>
    %14 = tpu.matmul %13, %11, %cst_11 {dimension_numbers = #tpu.dot_dimension_numbers<[1], [0], [0], [1], [0, 0, 1, 1], [], []>} : vector<8x128xbf16>, vector<128x128xbf16>, vector<8x128xf32> -> vector<8x128xf32>
    %15 = arith.addf %12, %14 : vector<8x128xf32>
    %c0_12 = arith.constant 0 : index
    %c0_13 = arith.constant 0 : index
    %16 = vector.load %arg8[%c0_12, %c0_13] : memref<8x128xf32, #tpu.memory_space<vmem>>, vector<8x128xf32>
    tpu.vector_store %arg8[%c0_12, %c0_13], %15 {strides = array<i32>} : memref<8x128xf32, #tpu.memory_space<vmem>>, vector<8x128xf32>,
    %c0_i32_14 = arith.constant 0 : i32
    %17 = arith.cmpi eq, %arg1, %c0_i32_14 : i32
    %18 = arith.extui %17 : i1 to i32
    %c0_i32_15 = arith.constant 0 : i32
    %19 = arith.cmpi ne, %18, %c0_i32_15 : i32
    scf.if %19 {
      %c0_16 = arith.constant 0 : index
      %c0_17 = arith.constant 0 : index
      %20 = vector.load %arg8[%c0_16, %c0_17] : memref<8x128xf32, #tpu.memory_space<vmem>>, vector<8x128xf32>
      %c0_18 = arith.constant 0 : index
      %c0_19 = arith.constant 0 : index
      %21 = vector.load %arg6[%c0_18, %c0_19] : memref<1x128xf32, #tpu.memory_space<vmem>>, vector<1x128xf32>
      %22 = vector.broadcast %21 : vector<1x128xf32> to vector<8x128xf32>
      %23 = arith.addf %20, %22 : vector<8x128xf32>
      %cst_20 = arith.constant dense<0xFF800000> : vector<8xf32>
      %24 = vector.multi_reduction <maximumf>, %23, %cst_20 [1] : vector<8x128xf32> to vector<8xf32>
      %25 = vector.shape_cast %24 : vector<8xf32> to vector<8x1xf32>
      %26 = vector.broadcast %25 : vector<8x1xf32> to vector<8x128xf32>
      %27 = arith.subf %23, %26 : vector<8x128xf32>
      %28 = math.exp %27 : vector<8x128xf32>
      %cst_21 = arith.constant dense<0.000000e+00> : vector<8xf32>
      %29 = vector.multi_reduction <add>, %28, %cst_21 [1] : vector<8x128xf32> to vector<8xf32>
      %30 = vector.shape_cast %29 : vector<8xf32> to vector<8x1xf32>
      %31 = math.log %30 : vector<8x1xf32>
      %32 = vector.broadcast %31 : vector<8x1xf32> to vector<8x128xf32>
      %33 = arith.subf %27, %32 : vector<8x128xf32>
      %c0_22 = arith.constant 0 : index
      %c0_23 = arith.constant 0 : index
      %34 = vector.load %arg7[%c0_22, %c0_23] : memref<8x128xf32, #tpu.memory_space<vmem>>, vector<8x128xf32>
      tpu.vector_store %arg7[%c0_22, %c0_23], %33 {strides = array<i32>} : memref<8x128xf32, #tpu.memory_space<vmem>>, vector<8x128xf32>,
    } else {
    }
    return
  }
  func.func @transform_0(%arg0: i32, %arg1: i32) -> (i32, i32) {
    %c0_i32 = arith.constant 0 : i32
    %c0_i32_0 = arith.constant 0 : i32
    return %arg0, %c0_i32 : i32, i32
  }
  func.func @transform_1(%arg0: i32, %arg1: i32) -> (i32, i32) {
    %c0_i32 = arith.constant 0 : i32
    %c0_i32_0 = arith.constant 0 : i32
    return %c0_i32, %arg1 : i32, i32
  }
  func.func @transform_2(%arg0: i32, %arg1: i32) -> (i32, i32) {
    %c0_i32 = arith.constant 0 : i32
    %c0_i32_0 = arith.constant 0 : i32
    return %c0_i32, %arg1 : i32, i32
  }
  func.func @transform_3(%arg0: i32, %arg1: i32) -> (i32, i32) {
    %c0_i32 = arith.constant 0 : i32
    %c0_i32_0 = arith.constant 0 : i32
    return %arg1, %c0_i32 : i32, i32
  }
  func.func @transform_4(%arg0: i32, %arg1: i32) -> (i32, i32) {
    %c0_i32 = arith.constant 0 : i32
    %c0_i32_0 = arith.constant 0 : i32
    %c0_i32_1 = arith.constant 0 : i32
    return %c0_i32, %c0_i32_0 : i32, i32
  }
  func.func @transform_5(%arg0: i32, %arg1: i32) -> (i32, i32) {
    %c0_i32 = arith.constant 0 : i32
    %c0_i32_0 = arith.constant 0 : i32
    return %arg0, %c0_i32 : i32, i32
  }
}

module attributes {stable_mosaic.version = 11 : i64} {
  func.func @_mlp_kernel(%arg0: i32, %arg1: i32, %arg2: memref<8x2048xbf16, #tpu.memory_space<vmem>>, %arg3: memref<2048x128xbf16, #tpu.memory_space<vmem>>, %arg4: memref<1x128xf32, #tpu.memory_space<vmem>>, %arg5: memref<128x128xbf16, #tpu.memory_space<vmem>>, %arg6: memref<1x128xf32, #tpu.memory_space<vmem>>, %arg7: memref<8x128xf32, #tpu.memory_space<vmem>>, %arg8: memref<8x128xf32, #tpu.memory_space<vmem>>) attributes {dimension_semantics = [#tpu.dimension_semantics<parallel>, #tpu.dimension_semantics<arbitrary>], iteration_bounds = array<i64: 1, 1>, scalar_prefetch = 0 : i64, scratch_operands = 1 : i64, tpu.core_type = #tpu.core_type<tc>, window_params = [{transform_indices = @transform_0, window_bounds = array<i64: 8, 2048>}, {transform_indices = @transform_1, window_bounds = array<i64: 2048, 128>}, {transform_indices = @transform_2, window_bounds = array<i64: 1, 128>}, {transform_indices = @transform_3, window_bounds = array<i64: 128, 128>}, {pipeline_mode = #tpu.pipeline_mode<synchronous>, transform_indices = @transform_4, window_bounds = array<i64: 1, 128>}, {transform_indices = @transform_5, window_bounds = array<i64: 8, 128>}]} {
    %c0_i32 = arith.constant 0 : i32
    %0 = arith.cmpi eq, %arg1, %c0_i32 : i32
    %1 = arith.extui %0 : i1 to i32
    %c0_i32_0 = arith.constant 0 : i32
    %2 = arith.cmpi ne, %1, %c0_i32_0 : i32
    scf.if %2 {
      %cst_16 = arith.constant 0.000000e+00 : f32
      %20 = vector.broadcast %cst_16 : f32 to vector<8x128xf32>
      %c0_17 = arith.constant 0 : index
      %c0_18 = arith.constant 0 : index
      %21 = vector.load %arg8[%c0_17, %c0_18] : memref<8x128xf32, #tpu.memory_space<vmem>>, vector<8x128xf32>
      tpu.vector_store %arg8[%c0_17, %c0_18], %20 {strides = array<i32>} : memref<8x128xf32, #tpu.memory_space<vmem>>, vector<8x128xf32>,
    } else {
    }
    %c0 = arith.constant 0 : index
    %c0_1 = arith.constant 0 : index
    %3 = vector.load %arg2[%c0, %c0_1] : memref<8x2048xbf16, #tpu.memory_space<vmem>>, vector<8x2048xbf16>
    %c0_2 = arith.constant 0 : index
    %c0_3 = arith.constant 0 : index
    %4 = vector.load %arg3[%c0_2, %c0_3] : memref<2048x128xbf16, #tpu.memory_space<vmem>>, vector<2048x128xbf16>
    %cst = arith.constant dense<0.000000e+00> : vector<8x128xf32>
    %5 = tpu.matmul %3, %4, %cst {dimension_numbers = #tpu.dot_dimension_numbers<[1], [0], [0], [1], [0, 0, 1, 1], [], []>} : vector<8x2048xbf16>, vector<2048x128xbf16>, vector<8x128xf32> -> vector<8x128xf32>
    %c0_4 = arith.constant 0 : index
    %c0_5 = arith.constant 0 : index
    %6 = vector.load %arg4[%c0_4, %c0_5] : memref<1x128xf32, #tpu.memory_space<vmem>>, vector<1x128xf32>
    %7 = vector.broadcast %6 : vector<1x128xf32> to vector<8x128xf32>
    %8 = arith.addf %5, %7 : vector<8x128xf32>
    %cst_6 = arith.constant 0.000000e+00 : f32
    %9 = vector.broadcast %cst_6 : f32 to vector<8x128xf32>
    %10 = arith.maximumf %8, %9 : vector<8x128xf32>
    %c0_7 = arith.constant 0 : index
    %c0_8 = arith.constant 0 : index
    %11 = vector.load %arg5[%c0_7, %c0_8] : memref<128x128xbf16, #tpu.memory_space<vmem>>, vector<128x128xbf16>
    %c0_9 = arith.constant 0 : index
    %c0_10 = arith.constant 0 : index
    %12 = vector.load %arg8[%c0_9, %c0_10] : memref<8x128xf32, #tpu.memory_space<vmem>>, vector<8x128xf32>
    %13 = arith.truncf %10 : vector<8x128xf32> to vector<8x128xbf16>
    %cst_11 = arith.constant dense<0.000000e+00> : vector<8x128xf32>
    %14 = tpu.matmul %13, %11, %cst_11 {dimension_numbers = #tpu.dot_dimension_numbers<[1], [0], [0], [1], [0, 0, 1, 1], [], []>} : vector<8x128xbf16>, vector<128x128xbf16>, vector<8x128xf32> -> vector<8x128xf32>
    %15 = arith.addf %12, %14 : vector<8x128xf32>
    %c0_12 = arith.constant 0 : index
    %c0_13 = arith.constant 0 : index
    %16 = vector.load %arg8[%c0_12, %c0_13] : memref<8x128xf32, #tpu.memory_space<vmem>>, vector<8x128xf32>
    tpu.vector_store %arg8[%c0_12, %c0_13], %15 {strides = array<i32>} : memref<8x128xf32, #tpu.memory_space<vmem>>, vector<8x128xf32>,
    %c0_i32_14 = arith.constant 0 : i32
    %17 = arith.cmpi eq, %arg1, %c0_i32_14 : i32
    %18 = arith.extui %17 : i1 to i32
    %c0_i32_15 = arith.constant 0 : i32
    %19 = arith.cmpi ne, %18, %c0_i32_15 : i32
    scf.if %19 {
      %c0_16 = arith.constant 0 : index
      %c0_17 = arith.constant 0 : index
      %20 = vector.load %arg8[%c0_16, %c0_17] : memref<8x128xf32, #tpu.memory_space<vmem>>, vector<8x128xf32>
      %c0_18 = arith.constant 0 : index
      %c0_19 = arith.constant 0 : index
      %21 = vector.load %arg6[%c0_18, %c0_19] : memref<1x128xf32, #tpu.memory_space<vmem>>, vector<1x128xf32>
      %22 = vector.broadcast %21 : vector<1x128xf32> to vector<8x128xf32>
      %23 = arith.addf %20, %22 : vector<8x128xf32>
      %cst_20 = arith.constant dense<0xFF800000> : vector<8xf32>
      %24 = vector.multi_reduction <maximumf>, %23, %cst_20 [1] : vector<8x128xf32> to vector<8xf32>
      %25 = vector.shape_cast %24 : vector<8xf32> to vector<8x1xf32>
      %26 = vector.broadcast %25 : vector<8x1xf32> to vector<8x128xf32>
      %27 = arith.subf %23, %26 : vector<8x128xf32>
      %28 = math.exp %27 : vector<8x128xf32>
      %cst_21 = arith.constant dense<0.000000e+00> : vector<8xf32>
      %29 = vector.multi_reduction <add>, %28, %cst_21 [1] : vector<8x128xf32> to vector<8xf32>
      %30 = vector.shape_cast %29 : vector<8xf32> to vector<8x1xf32>
      %31 = math.log %30 : vector<8x1xf32>
      %32 = vector.broadcast %31 : vector<8x1xf32> to vector<8x128xf32>
      %33 = arith.subf %27, %32 : vector<8x128xf32>
      %c0_22 = arith.constant 0 : index
      %c0_23 = arith.constant 0 : index
      %34 = vector.load %arg7[%c0_22, %c0_23] : memref<8x128xf32, #tpu.memory_space<vmem>>, vector<8x128xf32>
      tpu.vector_store %arg7[%c0_22, %c0_23], %33 {strides = array<i32>} : memref<8x128xf32, #tpu.memory_space<vmem>>, vector<8x128xf32>,
    } else {
    }
    return
  }
  func.func @transform_0(%arg0: i32, %arg1: i32) -> (i32, i32) {
    %c0_i32 = arith.constant 0 : i32
    %c0_i32_0 = arith.constant 0 : i32
    return %arg0, %c0_i32 : i32, i32
  }
  func.func @transform_1(%arg0: i32, %arg1: i32) -> (i32, i32) {
    %c0_i32 = arith.constant 0 : i32
    %c0_i32_0 = arith.constant 0 : i32
    return %c0_i32, %arg1 : i32, i32
  }
  func.func @transform_2(%arg0: i32, %arg1: i32) -> (i32, i32) {
    %c0_i32 = arith.constant 0 : i32
    %c0_i32_0 = arith.constant 0 : i32
    return %c0_i32, %arg1 : i32, i32
  }
  func.func @transform_3(%arg0: i32, %arg1: i32) -> (i32, i32) {
    %c0_i32 = arith.constant 0 : i32
    %c0_i32_0 = arith.constant 0 : i32
    return %arg1, %c0_i32 : i32, i32
  }
  func.func @transform_4(%arg0: i32, %arg1: i32) -> (i32, i32) {
    %c0_i32 = arith.constant 0 : i32
    %c0_i32_0 = arith.constant 0 : i32
    %c0_i32_1 = arith.constant 0 : i32
    return %c0_i32, %c0_i32_0 : i32, i32
  }
  func.func @transform_5(%arg0: i32, %arg1: i32) -> (i32, i32) {
    %c0_i32 = arith.constant 0 : i32
    %c0_i32_0 = arith.constant 0 : i32
    return %arg0, %c0_i32 : i32, i32
  }
}

</mosaic_0001>

<bundles_post_ra>
// kernel: tpu_custom_call.1
= control target key start
LH: loop header
LB: loop body
LE: loop exit
PB: predicated region body
PF: predicated region fallthrough
CT: control target
= control target key end

     0   :  { %10 = vsyncpa [#allocation4], 0  ;;  %s2339_s0 = inlined_call_operand.hbm [shape: bf16[8,2048], index: 0, kind: input, shape index: {}]   ;;  %s2340_s1 = inlined_call_operand.hbm [shape: bf16[2048,128], index: 1, kind: input, shape index: {}]   ;;  %s2341_s2 = inlined_call_operand.vmem [shape: f32[1,128], index: 2, kind: input, shape index: {}]   ;;  %s2342_s3 = inlined_call_operand.hbm [shape: bf16[128,128], index: 3, kind: input, shape index: {}]   ;;  %s2343_s4 = inlined_call_operand.vmem [shape: f32[1,128], index: 4, kind: input, shape index: {}]   ;;  %s2344_s5 = inlined_call_operand.hbm [shape: f32[8,128], index: 5, kind: output, shape index: {}]  }
   0x1   :  { %11 = vsyncpa [#allocation7], 0  ;;  %s28_s20 = sshll.u32 %s2340_s1, 4  ;;  %s29_s20 = int_to_ptr.hbm [resolvable:$true] %s28_s20 }
   0x2   :  { %12 = vsyncpa [#allocation5], 0  ;;  %s2285_s21 = smov [#allocation6]   ;;  %s18_s25 = sshll.u32 %s2339_s0, 4  ;;  %s19_s25 = int_to_ptr.hbm [resolvable:$true] %s18_s25 }
   0x3   :  { %s30_s22 = sshll.u32 %s2285_s21, 4  ;;  %s2286_s26 = smov 64   ;;  %s31_s22 = int_to_ptr.vmem [resolvable:$true] %s30_s22 }
   0x4   :  { %s2287_s27 = smov 4   ;;  %s2288_s28 = smov [#allocation3]  }
   0x5   :  { %36 = dma.hbm_to_vmem [thread:$0]  %s29_s20, 16384, %s31_s22, [#allocation7], %s2286_s26, %s2286_s26, %s2287_s27  }
   0x6   :  { %s20_s29 = sshll.u32 %s2288_s28, 4  ;;  %s43_s7 = sshll.u32 %s2342_s3, 4  ;;  %s21_s29 = int_to_ptr.vmem [resolvable:$true] %s20_s29  ;;  %s44_s7 = int_to_ptr.hbm [resolvable:$true] %s43_s7 }
   0x7   :  { %23 = dma.hbm_to_vmem [thread:$0]  %s19_s25, 1024, %s21_s29, [#allocation4]  }
   0x8   :  { %s2289_s1 = smov [#allocation8]  }
   0x9   :  { %s45_s8 = sshll.u32 %s2289_s1, 4  ;;  %s46_s8 = int_to_ptr.vmem [resolvable:$true] %s45_s8 }
   0xa   :  { %51 = dma.hbm_to_vmem [thread:$0]  %s44_s7, 1024, %s46_s8, [#allocation7], %s2286_s26, %s2286_s26, %s2287_s27  }
   0xb   :  { %2279 = dma.done.wait [#allocation4], 1024  }
   0xc   :  { %2280 = vsyncadd [#allocation4], 4294966272 }
   0xd   :  { %2281 = dma.done.wait [#allocation7], 17408  }
   0xe   :  { %2282 = vsyncadd [#allocation7], 4294949888  ;;  %v2042_v0 = vld [vmem:[#allocation6 + $0x38] sm:$0xff]  ;;  %v2041_v4 = vld [vmem:[#allocation6 + $0x30] sm:$0xff]  ;;  %s2290_s10 = smov [#allocation9]   ;;  %s1480_s14 = sshll.u32 %s2344_s5, 4  ;;  %s1481_s14 = int_to_ptr.hbm [resolvable:$true] %s1480_s14 }
   0xf   :  { %v2050_v1 = vld [vmem:[#allocation6 + $0x78] sm:$0xff]  ;;  %1163 = vmatpush.bf16.msra.mxu0 %v2042_v0  ;;  %v2049_v5 = vld [vmem:[#allocation6 + $0x70] sm:$0xff]  ;;  %v2040_v8 = vld [vmem:[#allocation6 + $0x28] sm:$0xff]  ;;  %s1478_s11 = sshll.u32 %s2290_s10, 4  ;;  %s1479_s11 = int_to_ptr.vmem [resolvable:$true] %s1478_s11 }
  0x10   :  { %v2058_v2 = vld [vmem:[#allocation6 + $0xb8] sm:$0xff]  ;;  %1176 = vmatpush.bf16.msra.mxu1 %v2050_v1  ;;  %v2057_v6 = vld [vmem:[#allocation6 + $0xb0] sm:$0xff]  ;;  %v2048_v9 = vld [vmem:[#allocation6 + $0x68] sm:$0xff] }
  0x11   :  { %v2066_v3 = vld [vmem:[#allocation6 + $0xf8] sm:$0xff]  ;;  %1189 = vmatpush.bf16.msra.mxu2 %v2058_v2  ;;  %v2065_v7 = vld [vmem:[#allocation6 + $0xf0] sm:$0xff]  ;;  %v2056_v10 = vld [vmem:[#allocation6 + $0xa8] sm:$0xff] }
  0x12   :  { %1202 = vmatpush.bf16.msra.mxu3 %v2066_v3  ;;  %v2064_v11 = vld [vmem:[#allocation6 + $0xe8] sm:$0xff]  ;;  %v2039_v12 = vld [vmem:[#allocation6 + $0x20] sm:$0xff]  ;;  %v2038_v16 = vld [vmem:[#allocation6 + $0x18] sm:$0xff] }
  0x13   :  { %1164 = vmatpush.bf16.msra.mxu0 %v2041_v4  ;;  %v2047_v13 = vld [vmem:[#allocation6 + $0x60] sm:$0xff]  ;;  %v2046_v17 = vld [vmem:[#allocation6 + $0x58] sm:$0xff]  ;;  %v2037_v20 = vld [vmem:[#allocation6 + $0x10] sm:$0xff] }
  0x14   :  { %1177 = vmatpush.bf16.msra.mxu1 %v2049_v5  ;;  %v2055_v14 = vld [vmem:[#allocation6 + $0xa0] sm:$0xff]  ;;  %v2054_v18 = vld [vmem:[#allocation6 + $0x98] sm:$0xff]  ;;  %v2045_v21 = vld [vmem:[#allocation6 + $0x50] sm:$0xff] }
  0x15   :  { %1190 = vmatpush.bf16.msra.mxu2 %v2057_v6  ;;  %v2063_v15 = vld [vmem:[#allocation6 + $0xe0] sm:$0xff]  ;;  %v2062_v19 = vld [vmem:[#allocation6 + $0xd8] sm:$0xff]  ;;  %v2053_v22 = vld [vmem:[#allocation6 + $0x90] sm:$0xff] }
  0x16   :  { %1203 = vmatpush.bf16.msra.mxu3 %v2065_v7  ;;  %v2061_v23 = vld [vmem:[#allocation6 + $0xd0] sm:$0xff]  ;;  %v2036_v24 = vld [vmem:[#allocation6 + $0x8] sm:$0xff]  ;;  %v71_v29 = vld [vmem:[#allocation3] sm:$0xff] }
  0x17   :  { %1165 = vmatpush.bf16.msra.mxu0 %v2040_v8  ;;  %v2044_v25 = vld [vmem:[#allocation6 + $0x48] sm:$0xff]  ;;  %v2035_v30 = vld [vmem:[#allocation6] sm:$0xff]  ;;  %v347_v33 = vunpack.c.l.b16 %v71_v29  ;;  %v348_v37 = vunpack.c.h.b16 %v71_v29  ;;  %v2074_v38 = vld [vmem:[#allocation6 + $0x138] sm:$0xff] }
  0x18   :  { %1178 = vmatpush.bf16.msra.mxu1 %v2048_v9  ;;  %v2052_v26 = vld [vmem:[#allocation6 + $0x88] sm:$0xff]  ;;  %v2043_v31 = vld [vmem:[#allocation6 + $0x40] sm:$0xff]  ;;  %v2082_v39 = vld [vmem:[#allocation6 + $0x178] sm:$0xff] }
  0x19   :  { %1191 = vmatpush.bf16.msra.mxu2 %v2056_v10  ;;  %v2060_v27 = vld [vmem:[#allocation6 + $0xc8] sm:$0xff]  ;;  %v2051_v34 = vld [vmem:[#allocation6 + $0x80] sm:$0xff]  ;;  %v2090_v40 = vld [vmem:[#allocation6 + $0x1b8] sm:$0xff]  ;;  %v363_v43 = vpack.c.b16 %v347_v33, %v347_v33  ;;  %v364_v45 = vpack.c.b16 %v348_v37, %v348_v37 }
  0x1a   :  { %1204 = vmatpush.bf16.msra.mxu3 %v2064_v11  ;;  %v72_v28 = vld [vmem:[#allocation3 + $0x8] sm:$0xff]  ;;  %v2059_v35 = vld [vmem:[#allocation6 + $0xc0] sm:$0xff]  ;;  %v2098_v41 = vld [vmem:[#allocation6 + $0x1f8] sm:$0xff] }
  0x1b   :  { %1166 = vmatpush.bf16.msra.mxu0 %v2039_v12  ;;  %v349_v32 = vunpack.c.l.b16 %v72_v28  ;;  %v350_v36 = vunpack.c.h.b16 %v72_v28  ;;  %v2073_v46 = vld [vmem:[#allocation6 + $0x130] sm:$0xff]  ;;  %v2072_v50 = vld [vmem:[#allocation6 + $0x128] sm:$0xff]  ;;  %v2071_v54 = vld [vmem:[#allocation6 + $0x120] sm:$0xff] }
  0x1c   :  { %1179 = vmatpush.bf16.msra.mxu1 %v2047_v13  ;;  %v2081_v47 = vld [vmem:[#allocation6 + $0x170] sm:$0xff]  ;;  %v2080_v51 = vld [vmem:[#allocation6 + $0x168] sm:$0xff]  ;;  %v2079_v55 = vld [vmem:[#allocation6 + $0x160] sm:$0xff] }
  0x1d   :  { %1192 = vmatpush.bf16.msra.mxu2 %v2055_v14  ;;  %v365_v42 = vpack.c.b16 %v349_v32, %v349_v32  ;;  %v366_v44 = vpack.c.b16 %v350_v36, %v350_v36  ;;  %v2089_v48 = vld [vmem:[#allocation6 + $0x1b0] sm:$0xff]  ;;  %v2088_v52 = vld [vmem:[#allocation6 + $0x1a8] sm:$0xff]  ;;  %v2087_v56 = vld [vmem:[#allocation6 + $0x1a0] sm:$0xff] }
  0x1e   :  { %1205 = vmatpush.bf16.msra.mxu3 %v2063_v15  ;;  %v2097_v49 = vld [vmem:[#allocation6 + $0x1f0] sm:$0xff]  ;;  %v2096_v53 = vld [vmem:[#allocation6 + $0x1e8] sm:$0xff]  ;;  %v2095_v57 = vld [vmem:[#allocation6 + $0x1e0] sm:$0xff] }
  0x1f   :  { %1167 = vmatpush.bf16.msra.mxu0 %v2038_v16  ;;  %v2070_v58 = vld [vmem:[#allocation6 + $0x118] sm:$0xff]  ;;  %v2069_v62 = vld [vmem:[#allocation6 + $0x110] sm:$0xff]  ;;  %v2068_v2 = vld [vmem:[#allocation6 + $0x108] sm:$0xff] }
  0x20   :  { %1180 = vmatpush.bf16.msra.mxu1 %v2046_v17  ;;  %v2078_v59 = vld [vmem:[#allocation6 + $0x158] sm:$0xff]  ;;  %v2077_v63 = vld [vmem:[#allocation6 + $0x150] sm:$0xff]  ;;  %v2076_v3 = vld [vmem:[#allocation6 + $0x148] sm:$0xff] }
  0x21   :  { %1193 = vmatpush.bf16.msra.mxu2 %v2054_v18  ;;  %v2086_v60 = vld [vmem:[#allocation6 + $0x198] sm:$0xff]  ;;  %v2085_v0 = vld [vmem:[#allocation6 + $0x190] sm:$0xff]  ;;  %v2084_v4 = vld [vmem:[#allocation6 + $0x188] sm:$0xff] }
  0x22   :  { %1206 = vmatpush.bf16.msra.mxu3 %v2062_v19  ;;  %v2094_v61 = vld [vmem:[#allocation6 + $0x1d8] sm:$0xff]  ;;  %v2093_v1 = vld [vmem:[#allocation6 + $0x1d0] sm:$0xff]  ;;  %v2092_v5 = vld [vmem:[#allocation6 + $0x1c8] sm:$0xff] }
  0x23   :  { %1168 = vmatpush.bf16.msra.mxu0 %v2037_v20  ;;  %v74_v6 = vld [vmem:[#allocation3 + $0x18] sm:$0xff]  ;;  %v73_v7 = vld [vmem:[#allocation3 + $0x10] sm:$0xff]  ;;  %v2067_v8 = vld [vmem:[#allocation6 + $0x100] sm:$0xff] }
  0x24   :  { %1181 = vmatpush.bf16.msra.mxu1 %v2045_v21  ;;  %v2075_v9 = vld [vmem:[#allocation6 + $0x140] sm:$0xff]  ;;  %v353_v10 = vunpack.c.l.b16 %v74_v6  ;;  %v351_v11 = vunpack.c.l.b16 %v73_v7  ;;  %v354_v14 = vunpack.c.h.b16 %v74_v6  ;;  %v352_v15 = vunpack.c.h.b16 %v73_v7  ;;  %v2106_v16 = vld [vmem:[#allocation6 + $0x238] sm:$0xff]  ;;  %v2104_v28 = vld [vmem:[#allocation6 + $0x228] sm:$0xff] }
  0x25   :  { %1194 = vmatpush.bf16.msra.mxu2 %v2053_v22  ;;  %v2083_v12 = vld [vmem:[#allocation6 + $0x180] sm:$0xff]  ;;  %v2114_v17 = vld [vmem:[#allocation6 + $0x278] sm:$0xff]  ;;  %v2112_v29 = vld [vmem:[#allocation6 + $0x268] sm:$0xff] }
  0x26   :  { %1207 = vmatpush.bf16.msra.mxu3 %v2061_v23  ;;  %v2091_v13 = vld [vmem:[#allocation6 + $0x1c0] sm:$0xff]  ;;  %v2122_v18 = vld [vmem:[#allocation6 + $0x2b8] sm:$0xff]  ;;  %v369_v20 = vpack.c.b16 %v353_v10, %v353_v10  ;;  %v367_v21 = vpack.c.b16 %v351_v11, %v351_v11  ;;  %v370_v22 = vpack.c.b16 %v354_v14, %v354_v14  ;;  %v368_v23 = vpack.c.b16 %v352_v15, %v352_v15  ;;  %v2136_v6 = vld [vmem:[#allocation6 + $0x328] sm:$0xff] }
  0x27   :  { %1169 = vmatpush.bf16.msra.mxu0 %v2036_v24  ;;  %v2130_v19 = vld [vmem:[#allocation6 + $0x2f8] sm:$0xff]  ;;  %v2105_v24 = vld [vmem:[#allocation6 + $0x230] sm:$0xff]  ;;  %v2103_v32 = vld [vmem:[#allocation6 + $0x220] sm:$0xff] }
  0x28   :  { %1182 = vmatpush.bf16.msra.mxu1 %v2044_v25  ;;  %v2113_v25 = vld [vmem:[#allocation6 + $0x270] sm:$0xff]  ;;  %v2111_v33 = vld [vmem:[#allocation6 + $0x260] sm:$0xff]  ;;  %v2102_v36 = vld [vmem:[#allocation6 + $0x218] sm:$0xff] }
  0x29   :  { %1195 = vmatpush.bf16.msra.mxu2 %v2052_v26  ;;  %v2121_v26 = vld [vmem:[#allocation6 + $0x2b0] sm:$0xff]  ;;  %v2110_v37 = vld [vmem:[#allocation6 + $0x258] sm:$0xff]  ;;  %v2144_v7 = vld [vmem:[#allocation6 + $0x368] sm:$0xff] }
  0x2a   :  { %1208 = vmatpush.bf16.msra.mxu3 %v2060_v27  ;;  %v2129_v27 = vld [vmem:[#allocation6 + $0x2f0] sm:$0xff]  ;;  %v2135_v10 = vld [vmem:[#allocation6 + $0x320] sm:$0xff]  ;;  %v2134_v14 = vld [vmem:[#allocation6 + $0x318] sm:$0xff] }
  0x2b   :  { %1170 = vmatpush.bf16.msra.mxu0 %v2035_v30  ;;  %v2120_v30 = vld [vmem:[#allocation6 + $0x2a8] sm:$0xff]  ;;  %v2143_v11 = vld [vmem:[#allocation6 + $0x360] sm:$0xff]  ;;  %v2142_v15 = vld [vmem:[#allocation6 + $0x358] sm:$0xff] }
  0x2c   :  { %1183 = vmatpush.bf16.msra.mxu1 %v2043_v31  ;;  %v2128_v31 = vld [vmem:[#allocation6 + $0x2e8] sm:$0xff] }
  0x2d   :  { %1196 = vmatpush.bf16.msra.mxu2 %v2051_v34  ;;  %v2119_v34 = vld [vmem:[#allocation6 + $0x2a0] sm:$0xff] }
  0x2e   :  { %1209 = vmatpush.bf16.msra.mxu3 %v2059_v35  ;;  %1171 = vmatmul.bf16.vlgmr.msra.gmra.mxu0 %v363_v43  ;;  %v2127_v35 = vld [vmem:[#allocation6 + $0x2e0] sm:$0xff]  ;;  %v2125_v43 = vld [vmem:[#allocation6 + $0x2d0] sm:$0xff] }
  0x2f   :  { %1215 = vmatpush.bf16.msrb.mxu0 %v2074_v38  ;;  %1184 = vmatmul.bf16.vlgmr.msra.gmra.mxu1 %v364_v45  ;;  %v2118_v38 = vld [vmem:[#allocation6 + $0x298] sm:$0xff]  ;;  %v2108_v45 = vld [vmem:[#allocation6 + $0x248] sm:$0xff] }
  0x30   :  { %1228 = vmatpush.bf16.msrb.mxu1 %v2082_v39  ;;  %1197 = vmatmul.bf16.vlgmr.msra.gmra.mxu2 %v365_v42  ;;  %v2126_v39 = vld [vmem:[#allocation6 + $0x2d8] sm:$0xff]  ;;  %v2117_v42 = vld [vmem:[#allocation6 + $0x290] sm:$0xff] }
  0x31   :  { %1241 = vmatpush.bf16.msrb.mxu2 %v2090_v40  ;;  %1210 = vmatmul.bf16.vlgmr.msra.gmra.mxu3 %v366_v44  ;;  %v2101_v40 = vld [vmem:[#allocation6 + $0x210] sm:$0xff]  ;;  %v2100_v44 = vld [vmem:[#allocation6 + $0x208] sm:$0xff] }
  0x32   :  { %1254 = vmatpush.bf16.msrb.mxu3 %v2098_v41  ;;  %v2109_v41 = vld [vmem:[#allocation6 + $0x250] sm:$0xff] }
  0x33   :  { %1216 = vmatpush.bf16.msrb.mxu0 %v2073_v46  ;;  %v2116_v46 = vld [vmem:[#allocation6 + $0x288] sm:$0xff] }
  0x34   :  { %1229 = vmatpush.bf16.msrb.mxu1 %v2081_v47  ;;  %v2124_v47 = vld [vmem:[#allocation6 + $0x2c8] sm:$0xff] }
  0x35   :  { %1242 = vmatpush.bf16.msrb.mxu2 %v2089_v48  ;;  %v75_v48 = vld [vmem:[#allocation3 + $0x20] sm:$0xff] }
  0x36   :  { %1255 = vmatpush.bf16.msrb.mxu3 %v2097_v49  ;;  %v76_v49 = vld [vmem:[#allocation3 + $0x28] sm:$0xff] }
  0x37   :  { %1217 = vmatpush.bf16.msrb.mxu0 %v2072_v50  ;;  %v2099_v50 = vld [vmem:[#allocation6 + $0x200] sm:$0xff] }
  0x38   :  { %1230 = vmatpush.bf16.msrb.mxu1 %v2080_v51  ;;  %v2107_v51 = vld [vmem:[#allocation6 + $0x240] sm:$0xff] }
  0x39   :  { %1243 = vmatpush.bf16.msrb.mxu2 %v2088_v52  ;;  %v355_v52 = vunpack.c.l.b16 %v75_v48 }
  0x3a   :  { %1256 = vmatpush.bf16.msrb.mxu3 %v2096_v53  ;;  %v357_v53 = vunpack.c.l.b16 %v76_v49 }
  0x3b   :  { %1218 = vmatpush.bf16.msrb.mxu0 %v2071_v54  ;;  %v2115_v54 = vld [vmem:[#allocation6 + $0x280] sm:$0xff] }
  0x3c   :  { %1231 = vmatpush.bf16.msrb.mxu1 %v2079_v55  ;;  %v2123_v55 = vld [vmem:[#allocation6 + $0x2c0] sm:$0xff] }
  0x3d   :  { %1244 = vmatpush.bf16.msrb.mxu2 %v2087_v56  ;;  %v356_v56 = vunpack.c.h.b16 %v75_v48 }
  0x3e   :  { %1257 = vmatpush.bf16.msrb.mxu3 %v2095_v57  ;;  %v358_v57 = vunpack.c.h.b16 %v76_v49 }
  0x3f   :  { %1219 = vmatpush.bf16.msrb.mxu0 %v2070_v58  ;;  %v2138_v58 = vld [vmem:[#allocation6 + $0x338] sm:$0xff] }
  0x40   :  { %1232 = vmatpush.bf16.msrb.mxu1 %v2078_v59  ;;  %v2146_v59 = vld [vmem:[#allocation6 + $0x378] sm:$0xff] }
  0x41   :  { %1245 = vmatpush.bf16.msrb.mxu2 %v2086_v60  ;;  %v2154_v60 = vld [vmem:[#allocation6 + $0x3b8] sm:$0xff] }
  0x42   :  { %1258 = vmatpush.bf16.msrb.mxu3 %v2094_v61  ;;  %v2162_v61 = vld [vmem:[#allocation6 + $0x3f8] sm:$0xff] }
  0x43   :  { %1220 = vmatpush.bf16.msrb.mxu0 %v2069_v62  ;;  %v371_v62 = vpack.c.b16 %v355_v52, %v355_v52 }
  0x44   :  { %1233 = vmatpush.bf16.msrb.mxu1 %v2077_v63  ;;  %v373_v63 = vpack.c.b16 %v357_v53, %v357_v53 }
  0x45   :  { %1246 = vmatpush.bf16.msrb.mxu2 %v2085_v0  ;;  %v372_v0 = vpack.c.b16 %v356_v56, %v356_v56 }
  0x46   :  { %1259 = vmatpush.bf16.msrb.mxu3 %v2093_v1  ;;  %v374_v1 = vpack.c.b16 %v358_v57, %v358_v57  ;;  %v2170_v57 = vld [vmem:[#allocation8 + $0x38] sm:$0xff] }
  0x47   :  { %1221 = vmatpush.bf16.msrb.mxu0 %v2068_v2  ;;  %v2137_v2 = vld [vmem:[#allocation6 + $0x330] sm:$0xff] }
  0x48   :  { %1234 = vmatpush.bf16.msrb.mxu1 %v2076_v3  ;;  %v2145_v3 = vld [vmem:[#allocation6 + $0x370] sm:$0xff] }
  0x49   :  { %1247 = vmatpush.bf16.msrb.mxu2 %v2084_v4  ;;  %v2153_v4 = vld [vmem:[#allocation6 + $0x3b0] sm:$0xff] }
  0x4a   :  { %1260 = vmatpush.bf16.msrb.mxu3 %v2092_v5  ;;  %v2161_v5 = vld [vmem:[#allocation6 + $0x3f0] sm:$0xff] }
  0x4b   :  { %1222 = vmatpush.bf16.msrb.mxu0 %v2067_v8  ;;  %v2152_v8 = vld [vmem:[#allocation6 + $0x3a8] sm:$0xff] }
  0x4c   :  { %1235 = vmatpush.bf16.msrb.mxu1 %v2075_v9  ;;  %v2160_v9 = vld [vmem:[#allocation6 + $0x3e8] sm:$0xff] }
  0x4d   :  { %1248 = vmatpush.bf16.msrb.mxu2 %v2083_v12  ;;  %v2151_v12 = vld [vmem:[#allocation6 + $0x3a0] sm:$0xff] }
  0x4e   :  { %1261 = vmatpush.bf16.msrb.mxu3 %v2091_v13  ;;  %1223 = vmatmul.bf16.vlgmr.msrb.gmra.mxu0 %v367_v21  ;;  %v2159_v13 = vld [vmem:[#allocation6 + $0x3e0] sm:$0xff]  ;;  %v2157_v21 = vld [vmem:[#allocation6 + $0x3d0] sm:$0xff] }
  0x4f   :  { %1267 = vmatpush.bf16.msra.mxu0 %v2106_v16  ;;  %1236 = vmatmul.bf16.vlgmr.msrb.gmra.mxu1 %v368_v23  ;;  %v2150_v16 = vld [vmem:[#allocation6 + $0x398] sm:$0xff]  ;;  %v2140_v23 = vld [vmem:[#allocation6 + $0x348] sm:$0xff] }
  0x50   :  { %1280 = vmatpush.bf16.msra.mxu1 %v2114_v17  ;;  %1249 = vmatmul.bf16.vlgmr.msrb.gmra.mxu2 %v369_v20  ;;  %v2158_v17 = vld [vmem:[#allocation6 + $0x3d8] sm:$0xff]  ;;  %v2149_v20 = vld [vmem:[#allocation6 + $0x390] sm:$0xff] }
  0x51   :  { %1293 = vmatpush.bf16.msra.mxu2 %v2122_v18  ;;  %1262 = vmatmul.bf16.vlgmr.msrb.gmra.mxu3 %v370_v22  ;;  %v2133_v18 = vld [vmem:[#allocation6 + $0x310] sm:$0xff]  ;;  %v2132_v22 = vld [vmem:[#allocation6 + $0x308] sm:$0xff] }
  0x52   :  { %1306 = vmatpush.bf16.msra.mxu3 %v2130_v19  ;;  %v2141_v19 = vld [vmem:[#allocation6 + $0x350] sm:$0xff] }
  0x53   :  { %1268 = vmatpush.bf16.msra.mxu0 %v2105_v24  ;;  %v77_v24 = vld [vmem:[#allocation3 + $0x30] sm:$0xff] }
  0x54   :  { %1281 = vmatpush.bf16.msra.mxu1 %v2113_v25  ;;  %v2148_v25 = vld [vmem:[#allocation6 + $0x388] sm:$0xff] }
  0x55   :  { %1294 = vmatpush.bf16.msra.mxu2 %v2121_v26  ;;  %v2156_v26 = vld [vmem:[#allocation6 + $0x3c8] sm:$0xff] }
  0x56   :  { %1307 = vmatpush.bf16.msra.mxu3 %v2129_v27  ;;  %v78_v27 = vld [vmem:[#allocation3 + $0x38] sm:$0xff] }
  0x57   :  { %1269 = vmatpush.bf16.msra.mxu0 %v2104_v28  ;;  %v359_v28 = vunpack.c.l.b16 %v77_v24 }
  0x58   :  { %1282 = vmatpush.bf16.msra.mxu1 %v2112_v29  ;;  %v360_v29 = vunpack.c.h.b16 %v77_v24 }
  0x59   :  { %1295 = vmatpush.bf16.msra.mxu2 %v2120_v30  ;;  %v2131_v30 = vld [vmem:[#allocation6 + $0x300] sm:$0xff] }
  0x5a   :  { %1308 = vmatpush.bf16.msra.mxu3 %v2128_v31  ;;  %v2139_v31 = vld [vmem:[#allocation6 + $0x340] sm:$0xff] }
  0x5b   :  { %1270 = vmatpush.bf16.msra.mxu0 %v2103_v32  ;;  %v361_v32 = vunpack.c.l.b16 %v78_v27 }
  0x5c   :  { %1283 = vmatpush.bf16.msra.mxu1 %v2111_v33  ;;  %v362_v33 = vunpack.c.h.b16 %v78_v27 }
  0x5d   :  { %1296 = vmatpush.bf16.msra.mxu2 %v2119_v34  ;;  %v2147_v34 = vld [vmem:[#allocation6 + $0x380] sm:$0xff] }
  0x5e   :  { %1309 = vmatpush.bf16.msra.mxu3 %v2127_v35  ;;  %v2155_v35 = vld [vmem:[#allocation6 + $0x3c0] sm:$0xff] }
  0x5f   :  { %1271 = vmatpush.bf16.msra.mxu0 %v2102_v36  ;;  %v375_v36 = vpack.c.b16 %v359_v28, %v359_v28 }
  0x60   :  { %1284 = vmatpush.bf16.msra.mxu1 %v2110_v37  ;;  %v376_v37 = vpack.c.b16 %v360_v29, %v360_v29 }
  0x61   :  { %1297 = vmatpush.bf16.msra.mxu2 %v2118_v38  ;;  %v377_v38 = vpack.c.b16 %v361_v32, %v361_v32 }
  0x62   :  { %1310 = vmatpush.bf16.msra.mxu3 %v2126_v39  ;;  %v378_v39 = vpack.c.b16 %v362_v33, %v362_v33 }
  0x63   :  { %1272 = vmatpush.bf16.msra.mxu0 %v2101_v40  ;;  %v2177_v40 = vld [vmem:[%s2341_s2] ss:$0 sm:$0xff] }
  0x64   :  { %1285 = vmatpush.bf16.msra.mxu1 %v2109_v41 }
  0x65   :  { %1298 = vmatpush.bf16.msra.mxu2 %v2117_v42 }
  0x66   :  { %1311 = vmatpush.bf16.msra.mxu3 %v2125_v43 }
  0x67   :  { %1273 = vmatpush.bf16.msra.mxu0 %v2100_v44 }
  0x68   :  { %1286 = vmatpush.bf16.msra.mxu1 %v2108_v45 }
  0x69   :  { %1299 = vmatpush.bf16.msra.mxu2 %v2116_v46 }
  0x6a   :  { %1312 = vmatpush.bf16.msra.mxu3 %v2124_v47 }
  0x6b   :  { %1274 = vmatpush.bf16.msra.mxu0 %v2099_v50 }
  0x6c   :  { %1287 = vmatpush.bf16.msra.mxu1 %v2107_v51 }
  0x6d   :  { %1300 = vmatpush.bf16.msra.mxu2 %v2115_v54 }
  0x6e   :  { %1313 = vmatpush.bf16.msra.mxu3 %v2123_v55  ;;  %1275 = vmatmul.bf16.vlgmr.msra.gmra.mxu0 %v371_v62 }
  0x6f   :  { %1319 = vmatpush.bf16.msrb.mxu0 %v2138_v58  ;;  %1288 = vmatmul.bf16.vlgmr.msra.gmra.mxu1 %v372_v0  ;;  %v2167_v0 = vld [vmem:[#allocation8 + $0x20] sm:$0xff] }
  0x70   :  { %1332 = vmatpush.bf16.msrb.mxu1 %v2146_v59  ;;  %1301 = vmatmul.bf16.vlgmr.msra.gmra.mxu2 %v373_v63 }
  0x71   :  { %1345 = vmatpush.bf16.msrb.mxu2 %v2154_v60  ;;  %1314 = vmatmul.bf16.vlgmr.msra.gmra.mxu3 %v374_v1  ;;  %v2169_v60 = vld [vmem:[#allocation8 + $0x30] sm:$0xff]  ;;  %v2166_v1 = vld [vmem:[#allocation8 + $0x18] sm:$0xff] }
  0x72   :  { %1358 = vmatpush.bf16.msrb.mxu3 %v2162_v61  ;;  %v2168_v61 = vld [vmem:[#allocation8 + $0x28] sm:$0xff] }
  0x73   :  { %1320 = vmatpush.bf16.msrb.mxu0 %v2137_v2 }
  0x74   :  { %1333 = vmatpush.bf16.msrb.mxu1 %v2145_v3  ;;  %v2165_v3 = vld [vmem:[#allocation8 + $0x10] sm:$0xff] }
  0x75   :  { %1346 = vmatpush.bf16.msrb.mxu2 %v2153_v4 }
  0x76   :  { %1359 = vmatpush.bf16.msrb.mxu3 %v2161_v5  ;;  %v2164_v5 = vld [vmem:[#allocation8 + $0x8] sm:$0xff] }
  0x77   :  { %1321 = vmatpush.bf16.msrb.mxu0 %v2136_v6 }
  0x78   :  { %1334 = vmatpush.bf16.msrb.mxu1 %v2144_v7 }
  0x79   :  { %1347 = vmatpush.bf16.msrb.mxu2 %v2152_v8 }
  0x7a   :  { %1360 = vmatpush.bf16.msrb.mxu3 %v2160_v9 }
  0x7b   :  { %1322 = vmatpush.bf16.msrb.mxu0 %v2135_v10  ;;  %v2163_v10 = vld [vmem:[#allocation8] sm:$0xff] }
  0x7c   :  { %1335 = vmatpush.bf16.msrb.mxu1 %v2143_v11 }
  0x7d   :  { %1348 = vmatpush.bf16.msrb.mxu2 %v2151_v12 }
  0x7e   :  { %1361 = vmatpush.bf16.msrb.mxu3 %v2159_v13 }
  0x7f   :  { %1323 = vmatpush.bf16.msrb.mxu0 %v2134_v14 }
  0x80   :  { %1336 = vmatpush.bf16.msrb.mxu1 %v2142_v15 }
  0x81   :  { %1349 = vmatpush.bf16.msrb.mxu2 %v2150_v16 }
  0x82   :  { %1362 = vmatpush.bf16.msrb.mxu3 %v2158_v17 }
  0x83   :  { %1324 = vmatpush.bf16.msrb.mxu0 %v2133_v18 }
  0x84   :  { %1337 = vmatpush.bf16.msrb.mxu1 %v2141_v19 }
  0x85   :  { %1350 = vmatpush.bf16.msrb.mxu2 %v2149_v20 }
  0x86   :  { %1363 = vmatpush.bf16.msrb.mxu3 %v2157_v21 }
  0x87   :  { %1325 = vmatpush.bf16.msrb.mxu0 %v2132_v22 }
  0x88   :  { %1338 = vmatpush.bf16.msrb.mxu1 %v2140_v23 }
  0x89   :  { %1351 = vmatpush.bf16.msrb.mxu2 %v2148_v25 }
  0x8a   :  { %1364 = vmatpush.bf16.msrb.mxu3 %v2156_v26 }
  0x8b   :  { %1326 = vmatpush.bf16.msrb.mxu0 %v2131_v30 }
  0x8c   :  { %1339 = vmatpush.bf16.msrb.mxu1 %v2139_v31 }
  0x8d   :  { %1352 = vmatpush.bf16.msrb.mxu2 %v2147_v34 }
  0x8e   :  { %1365 = vmatpush.bf16.msrb.mxu3 %v2155_v35  ;;  %1327 = vmatmul.bf16.vlgmr.msrb.gmra.mxu0 %v375_v36  ;;  %v2178_v35 = vld [vmem:[%s2343_s4] ss:$0 sm:$0xff] }
  0x8f   :  { %1340 = vmatmul.bf16.vlgmr.msrb.gmra.mxu1 %v376_v37  ;;  %1438 = vmatpush.bf16.msra.mxu0 %v2170_v57 }
  0x90   :  { %1353 = vmatmul.bf16.vlgmr.msrb.gmra.mxu2 %v377_v38 }
  0x91   :  { %1366 = vmatmul.bf16.vlgmr.msrb.gmra.mxu3 %v378_v39 }
  0x93   :  { %1439 = vmatpush.bf16.msra.mxu0 %v2169_v60 }
  0x97   :  { %1440 = vmatpush.bf16.msra.mxu0 %v2168_v61 }
  0x9b   :  { %1441 = vmatpush.bf16.msra.mxu0 %v2167_v0 }
  0x9f   :  { %1442 = vmatpush.bf16.msra.mxu0 %v2166_v1 }
  0xa3   :  { %1443 = vmatpush.bf16.msra.mxu0 %v2165_v3 }
  0xa7   :  { %1444 = vmatpush.bf16.msra.mxu0 %v2164_v5 }
  0xab   :  { %v1172_v41 = vpop.f32.mrf.mxu0  ;;  %1445 = vmatpush.bf16.msra.mxu0 %v2163_v10 }
  0xac   :  { %v1173_v42 = vadd.f32 %v2177_v40, %v1172_v41  ;;  %v1185_v43 = vpop.f32.mrf.mxu1 }
  0xae   :  { %v1186_v44 = vadd.f32 %v1185_v43, %v1173_v42 }
  0xb3   :  { %v1198_v45 = vpop.f32.mrf.mxu2  ;;  %v1174_v48 = vpop.f32.mrf.mxu0 }
  0xb4   :  { %v1199_v46 = vadd.f32 %v1198_v45, %v1186_v44  ;;  %v1211_v47 = vpop.f32.mrf.mxu3  ;;  %v1187_v50 = vpop.f32.mrf.mxu1 }
  0xb6   :  { %v1212_v49 = vadd.f32 %v1211_v47, %v1199_v46 }
  0xbb   :  { %v1200_v51 = vpop.f32.mrf.mxu2 }
  0xbc   :  { %v1213_v52 = vpop.f32.mrf.mxu3 }
  0xcb   :  { %v1224_v53 = vpop.f32.mrf.mxu0 }
  0xcc   :  { %v1237_v54 = vpop.f32.mrf.mxu1  ;;  %v1225_v6 = vadd.f32 %v1224_v53, %v1212_v49 }
  0xce   :  { %v1238_v11 = vadd.f32 %v1237_v54, %v1225_v6 }
  0xd3   :  { %v1250_v55 = vpop.f32.mrf.mxu2  ;;  %v1226_v58 = vpop.f32.mrf.mxu0 }
  0xd4   :  { %v1263_v56 = vpop.f32.mrf.mxu3  ;;  %v1239_v59 = vpop.f32.mrf.mxu1  ;;  %v1251_v13 = vadd.f32 %v1250_v55, %v1238_v11 }
  0xd6   :  { %v1264_v16 = vadd.f32 %v1263_v56, %v1251_v13 }
  0xdb   :  { %v1252_v62 = vpop.f32.mrf.mxu2 }
  0xdc   :  { %v1265_v63 = vpop.f32.mrf.mxu3 }
  0xeb   :  { %v1276_v2 = vpop.f32.mrf.mxu0 }
  0xec   :  { %v1289_v4 = vpop.f32.mrf.mxu1  ;;  %v1277_v17 = vadd.f32 %v1276_v2, %v1264_v16 }
  0xee   :  { %v1290_v18 = vadd.f32 %v1289_v4, %v1277_v17 }
  0xf3   :  { %v1302_v7 = vpop.f32.mrf.mxu2  ;;  %v1278_v9 = vpop.f32.mrf.mxu0 }
  0xf4   :  { %v1315_v8 = vpop.f32.mrf.mxu3  ;;  %v1291_v12 = vpop.f32.mrf.mxu1  ;;  %v1303_v19 = vadd.f32 %v1302_v7, %v1290_v18 }
  0xf6   :  { %v1316_v20 = vadd.f32 %v1315_v8, %v1303_v19 }
  0xfb   :  { %v1304_v14 = vpop.f32.mrf.mxu2 }
  0xfc   :  { %v1317_v15 = vpop.f32.mrf.mxu3 }
 0x10b   :  { %v1328_v21 = vpop.f32.mrf.mxu0 }
 0x10c   :  { %v1341_v22 = vpop.f32.mrf.mxu1  ;;  %v1329_v23 = vadd.f32 %v1328_v21, %v1316_v20 }
 0x10e   :  { %v1342_v24 = vadd.f32 %v1341_v22, %v1329_v23 }
 0x113   :  { %v1354_v25 = vpop.f32.mrf.mxu2  ;;  %v1330_v28 = vpop.f32.mrf.mxu0 }
 0x114   :  { %v1367_v26 = vpop.f32.mrf.mxu3  ;;  %v1355_v27 = vadd.f32 %v1354_v25, %v1342_v24  ;;  %v1343_v29 = vpop.f32.mrf.mxu1 }
 0x116   :  { %v1368_v30 = vadd.f32 %v1367_v26, %v1355_v27 }
 0x118   :  { %v1371_v31 = vmax.f32 %v1368_v30, 0.0 }
 0x11a   :  { %v1389_v32 = vpack.c.bf16 %v1371_v31, %v1371_v31 }
 0x11b   :  { %v1356_v33 = vpop.f32.mrf.mxu2 }
 0x11c   :  { %v1369_v34 = vpop.f32.mrf.mxu3  ;;  %1446 = vmatmul.bf16.vlgmr.msra.gmra.mxu0 %v1389_v32 }
 0x199   :  { %v1447_v36 = vpop.f32.mrf.mxu0 }
 0x19a   :  { %v1461_v37 = vadd.f32 %v2178_v35, %v1447_v36 }
 0x19c   :  { %1462 = vmax.xlane.f32.xlu0 %v1461_v37 }
 0x1a1   :  { %v1449_v38 = vpop.f32.mrf.mxu0 }
 0x20f   :  { %v1463_v39 = vpop.xlane.xlu0 %1462 }
 0x210   :  { %v1464_v40 = vsub.f32 %v1461_v37, %v1463_v39 }
 0x212   :  { %v1465_v41 = vmul.f32 1.442695, %v1464_v40 }
 0x214   :  { %2179 = vpow2.f32 %v1465_v41 }
 0x21a   :  { %v2180_v42 = vpop.eup %2179 }
 0x21b   :  { %1467 = vadd.xlane.f32.xlu0 %v2180_v42 }
 0x28e   :  { %v1468_v43 = vpop.xlane.xlu0 %1467 }
 0x28f   :  { %2181 = vlog2.f32 %v1468_v43 }
 0x295   :  { %v2182_v44 = vpop.eup %2181 }
 0x296   :  { %v1470_v45 = vmul.f32 0.6931472, %v2182_v44 }
 0x298   :  { %v1471_v46 = vsub.f32 %v1464_v40, %v1470_v45 }
 0x29a   :  { %1472 = vst [vmem:[#allocation9] sm:$0xff] %v1471_v46 }
 0x29b   :  { %1483 = dma.vmem_to_hbm [thread:$0]  %s1479_s11, 128, %s1481_s14, [#allocation5]  }
 0x29c   :  { %2283 = dma.done.wait [#allocation5], 128  }
 0x29d   :  { %2284 = vsyncadd [#allocation5], 4294967168 }
 0x29e   :  { %1488 = vsyncpa [#allocation4], 1 }
 0x29f   :  { %1489 = vsyncpa [#allocation7], 1 }
 0x2a0   :  { %1490 = vsyncpa [#allocation5], 1 }

// kernel: tpu_custom_call.1
= control target key start
LH: loop header
LB: loop body
LE: loop exit
PB: predicated region body
PF: predicated region fallthrough
CT: control target
= control target key end

     0   :  { %10 = vsyncpa [#allocation4], 0  ;;  %s2339_s0 = inlined_call_operand.hbm [shape: bf16[8,2048], index: 0, kind: input, shape index: {}]   ;;  %s2340_s1 = inlined_call_operand.hbm [shape: bf16[2048,128], index: 1, kind: input, shape index: {}]   ;;  %s2341_s2 = inlined_call_operand.vmem [shape: f32[1,128], index: 2, kind: input, shape index: {}]   ;;  %s2342_s3 = inlined_call_operand.hbm [shape: bf16[128,128], index: 3, kind: input, shape index: {}]   ;;  %s2343_s4 = inlined_call_operand.vmem [shape: f32[1,128], index: 4, kind: input, shape index: {}]   ;;  %s2344_s5 = inlined_call_operand.hbm [shape: f32[8,128], index: 5, kind: output, shape index: {}]  }
   0x1   :  { %11 = vsyncpa [#allocation7], 0  ;;  %s28_s20 = sshll.u32 %s2340_s1, 4  ;;  %s29_s20 = int_to_ptr.hbm [resolvable:$true] %s28_s20 }
   0x2   :  { %12 = vsyncpa [#allocation5], 0  ;;  %s2285_s21 = smov [#allocation6]   ;;  %s18_s25 = sshll.u32 %s2339_s0, 4  ;;  %s19_s25 = int_to_ptr.hbm [resolvable:$true] %s18_s25 }
   0x3   :  { %s30_s22 = sshll.u32 %s2285_s21, 4  ;;  %s2286_s26 = smov 64   ;;  %s31_s22 = int_to_ptr.vmem [resolvable:$true] %s30_s22 }
   0x4   :  { %s2287_s27 = smov 4   ;;  %s2288_s28 = smov [#allocation3]  }
   0x5   :  { %36 = dma.hbm_to_vmem [thread:$0]  %s29_s20, 16384, %s31_s22, [#allocation7], %s2286_s26, %s2286_s26, %s2287_s27  }
   0x6   :  { %s20_s29 = sshll.u32 %s2288_s28, 4  ;;  %s43_s7 = sshll.u32 %s2342_s3, 4  ;;  %s21_s29 = int_to_ptr.vmem [resolvable:$true] %s20_s29  ;;  %s44_s7 = int_to_ptr.hbm [resolvable:$true] %s43_s7 }
   0x7   :  { %23 = dma.hbm_to_vmem [thread:$0]  %s19_s25, 1024, %s21_s29, [#allocation4]  }
   0x8   :  { %s2289_s1 = smov [#allocation8]  }
   0x9   :  { %s45_s8 = sshll.u32 %s2289_s1, 4  ;;  %s46_s8 = int_to_ptr.vmem [resolvable:$true] %s45_s8 }
   0xa   :  { %51 = dma.hbm_to_vmem [thread:$0]  %s44_s7, 1024, %s46_s8, [#allocation7], %s2286_s26, %s2286_s26, %s2287_s27  }
   0xb   :  { %2279 = dma.done.wait [#allocation4], 1024  }
   0xc   :  { %2280 = vsyncadd [#allocation4], 4294966272 }
   0xd   :  { %2281 = dma.done.wait [#allocation7], 17408  }
   0xe   :  { %2282 = vsyncadd [#allocation7], 4294949888  ;;  %v2042_v0 = vld [vmem:[#allocation6 + $0x38] sm:$0xff]  ;;  %v2041_v4 = vld [vmem:[#allocation6 + $0x30] sm:$0xff]  ;;  %s2290_s10 = smov [#allocation9]   ;;  %s1480_s14 = sshll.u32 %s2344_s5, 4  ;;  %s1481_s14 = int_to_ptr.hbm [resolvable:$true] %s1480_s14 }
   0xf   :  { %v2050_v1 = vld [vmem:[#allocation6 + $0x78] sm:$0xff]  ;;  %1163 = vmatpush.bf16.msra.mxu0 %v2042_v0  ;;  %v2049_v5 = vld [vmem:[#allocation6 + $0x70] sm:$0xff]  ;;  %v2040_v8 = vld [vmem:[#allocation6 + $0x28] sm:$0xff]  ;;  %s1478_s11 = sshll.u32 %s2290_s10, 4  ;;  %s1479_s11 = int_to_ptr.vmem [resolvable:$true] %s1478_s11 }
  0x10   :  { %v2058_v2 = vld [vmem:[#allocation6 + $0xb8] sm:$0xff]  ;;  %1176 = vmatpush.bf16.msra.mxu1 %v2050_v1  ;;  %v2057_v6 = vld [vmem:[#allocation6 + $0xb0] sm:$0xff]  ;;  %v2048_v9 = vld [vmem:[#allocation6 + $0x68] sm:$0xff] }
  0x11   :  { %v2066_v3 = vld [vmem:[#allocation6 + $0xf8] sm:$0xff]  ;;  %1189 = vmatpush.bf16.msra.mxu2 %v2058_v2  ;;  %v2065_v7 = vld [vmem:[#allocation6 + $0xf0] sm:$0xff]  ;;  %v2056_v10 = vld [vmem:[#allocation6 + $0xa8] sm:$0xff] }
  0x12   :  { %1202 = vmatpush.bf16.msra.mxu3 %v2066_v3  ;;  %v2064_v11 = vld [vmem:[#allocation6 + $0xe8] sm:$0xff]  ;;  %v2039_v12 = vld [vmem:[#allocation6 + $0x20] sm:$0xff]  ;;  %v2038_v16 = vld [vmem:[#allocation6 + $0x18] sm:$0xff] }
  0x13   :  { %1164 = vmatpush.bf16.msra.mxu0 %v2041_v4  ;;  %v2047_v13 = vld [vmem:[#allocation6 + $0x60] sm:$0xff]  ;;  %v2046_v17 = vld [vmem:[#allocation6 + $0x58] sm:$0xff]  ;;  %v2037_v20 = vld [vmem:[#allocation6 + $0x10] sm:$0xff] }
  0x14   :  { %1177 = vmatpush.bf16.msra.mxu1 %v2049_v5  ;;  %v2055_v14 = vld [vmem:[#allocation6 + $0xa0] sm:$0xff]  ;;  %v2054_v18 = vld [vmem:[#allocation6 + $0x98] sm:$0xff]  ;;  %v2045_v21 = vld [vmem:[#allocation6 + $0x50] sm:$0xff] }
  0x15   :  { %1190 = vmatpush.bf16.msra.mxu2 %v2057_v6  ;;  %v2063_v15 = vld [vmem:[#allocation6 + $0xe0] sm:$0xff]  ;;  %v2062_v19 = vld [vmem:[#allocation6 + $0xd8] sm:$0xff]  ;;  %v2053_v22 = vld [vmem:[#allocation6 + $0x90] sm:$0xff] }
  0x16   :  { %1203 = vmatpush.bf16.msra.mxu3 %v2065_v7  ;;  %v2061_v23 = vld [vmem:[#allocation6 + $0xd0] sm:$0xff]  ;;  %v2036_v24 = vld [vmem:[#allocation6 + $0x8] sm:$0xff]  ;;  %v71_v29 = vld [vmem:[#allocation3] sm:$0xff] }
  0x17   :  { %1165 = vmatpush.bf16.msra.mxu0 %v2040_v8  ;;  %v2044_v25 = vld [vmem:[#allocation6 + $0x48] sm:$0xff]  ;;  %v2035_v30 = vld [vmem:[#allocation6] sm:$0xff]  ;;  %v347_v33 = vunpack.c.l.b16 %v71_v29  ;;  %v348_v37 = vunpack.c.h.b16 %v71_v29  ;;  %v2074_v38 = vld [vmem:[#allocation6 + $0x138] sm:$0xff] }
  0x18   :  { %1178 = vmatpush.bf16.msra.mxu1 %v2048_v9  ;;  %v2052_v26 = vld [vmem:[#allocation6 + $0x88] sm:$0xff]  ;;  %v2043_v31 = vld [vmem:[#allocation6 + $0x40] sm:$0xff]  ;;  %v2082_v39 = vld [vmem:[#allocation6 + $0x178] sm:$0xff] }
  0x19   :  { %1191 = vmatpush.bf16.msra.mxu2 %v2056_v10  ;;  %v2060_v27 = vld [vmem:[#allocation6 + $0xc8] sm:$0xff]  ;;  %v2051_v34 = vld [vmem:[#allocation6 + $0x80] sm:$0xff]  ;;  %v2090_v40 = vld [vmem:[#allocation6 + $0x1b8] sm:$0xff]  ;;  %v363_v43 = vpack.c.b16 %v347_v33, %v347_v33  ;;  %v364_v45 = vpack.c.b16 %v348_v37, %v348_v37 }
  0x1a   :  { %1204 = vmatpush.bf16.msra.mxu3 %v2064_v11  ;;  %v72_v28 = vld [vmem:[#allocation3 + $0x8] sm:$0xff]  ;;  %v2059_v35 = vld [vmem:[#allocation6 + $0xc0] sm:$0xff]  ;;  %v2098_v41 = vld [vmem:[#allocation6 + $0x1f8] sm:$0xff] }
  0x1b   :  { %1166 = vmatpush.bf16.msra.mxu0 %v2039_v12  ;;  %v349_v32 = vunpack.c.l.b16 %v72_v28  ;;  %v350_v36 = vunpack.c.h.b16 %v72_v28  ;;  %v2073_v46 = vld [vmem:[#allocation6 + $0x130] sm:$0xff]  ;;  %v2072_v50 = vld [vmem:[#allocation6 + $0x128] sm:$0xff]  ;;  %v2071_v54 = vld [vmem:[#allocation6 + $0x120] sm:$0xff] }
  0x1c   :  { %1179 = vmatpush.bf16.msra.mxu1 %v2047_v13  ;;  %v2081_v47 = vld [vmem:[#allocation6 + $0x170] sm:$0xff]  ;;  %v2080_v51 = vld [vmem:[#allocation6 + $0x168] sm:$0xff]  ;;  %v2079_v55 = vld [vmem:[#allocation6 + $0x160] sm:$0xff] }
  0x1d   :  { %1192 = vmatpush.bf16.msra.mxu2 %v2055_v14  ;;  %v365_v42 = vpack.c.b16 %v349_v32, %v349_v32  ;;  %v366_v44 = vpack.c.b16 %v350_v36, %v350_v36  ;;  %v2089_v48 = vld [vmem:[#allocation6 + $0x1b0] sm:$0xff]  ;;  %v2088_v52 = vld [vmem:[#allocation6 + $0x1a8] sm:$0xff]  ;;  %v2087_v56 = vld [vmem:[#allocation6 + $0x1a0] sm:$0xff] }
  0x1e   :  { %1205 = vmatpush.bf16.msra.mxu3 %v2063_v15  ;;  %v2097_v49 = vld [vmem:[#allocation6 + $0x1f0] sm:$0xff]  ;;  %v2096_v53 = vld [vmem:[#allocation6 + $0x1e8] sm:$0xff]  ;;  %v2095_v57 = vld [vmem:[#allocation6 + $0x1e0] sm:$0xff] }
  0x1f   :  { %1167 = vmatpush.bf16.msra.mxu0 %v2038_v16  ;;  %v2070_v58 = vld [vmem:[#allocation6 + $0x118] sm:$0xff]  ;;  %v2069_v62 = vld [vmem:[#allocation6 + $0x110] sm:$0xff]  ;;  %v2068_v2 = vld [vmem:[#allocation6 + $0x108] sm:$0xff] }
  0x20   :  { %1180 = vmatpush.bf16.msra.mxu1 %v2046_v17  ;;  %v2078_v59 = vld [vmem:[#allocation6 + $0x158] sm:$0xff]  ;;  %v2077_v63 = vld [vmem:[#allocation6 + $0x150] sm:$0xff]  ;;  %v2076_v3 = vld [vmem:[#allocation6 + $0x148] sm:$0xff] }
  0x21   :  { %1193 = vmatpush.bf16.msra.mxu2 %v2054_v18  ;;  %v2086_v60 = vld [vmem:[#allocation6 + $0x198] sm:$0xff]  ;;  %v2085_v0 = vld [vmem:[#allocation6 + $0x190] sm:$0xff]  ;;  %v2084_v4 = vld [vmem:[#allocation6 + $0x188] sm:$0xff] }
  0x22   :  { %1206 = vmatpush.bf16.msra.mxu3 %v2062_v19  ;;  %v2094_v61 = vld [vmem:[#allocation6 + $0x1d8] sm:$0xff]  ;;  %v2093_v1 = vld [vmem:[#allocation6 + $0x1d0] sm:$0xff]  ;;  %v2092_v5 = vld [vmem:[#allocation6 + $0x1c8] sm:$0xff] }
  0x23   :  { %1168 = vmatpush.bf16.msra.mxu0 %v2037_v20  ;;  %v74_v6 = vld [vmem:[#allocation3 + $0x18] sm:$0xff]  ;;  %v73_v7 = vld [vmem:[#allocation3 + $0x10] sm:$0xff]  ;;  %v2067_v8 = vld [vmem:[#allocation6 + $0x100] sm:$0xff] }
  0x24   :  { %1181 = vmatpush.bf16.msra.mxu1 %v2045_v21  ;;  %v2075_v9 = vld [vmem:[#allocation6 + $0x140] sm:$0xff]  ;;  %v353_v10 = vunpack.c.l.b16 %v74_v6  ;;  %v351_v11 = vunpack.c.l.b16 %v73_v7  ;;  %v354_v14 = vunpack.c.h.b16 %v74_v6  ;;  %v352_v15 = vunpack.c.h.b16 %v73_v7  ;;  %v2106_v16 = vld [vmem:[#allocation6 + $0x238] sm:$0xff]  ;;  %v2104_v28 = vld [vmem:[#allocation6 + $0x228] sm:$0xff] }
  0x25   :  { %1194 = vmatpush.bf16.msra.mxu2 %v2053_v22  ;;  %v2083_v12 = vld [vmem:[#allocation6 + $0x180] sm:$0xff]  ;;  %v2114_v17 = vld [vmem:[#allocation6 + $0x278] sm:$0xff]  ;;  %v2112_v29 = vld [vmem:[#allocation6 + $0x268] sm:$0xff] }
  0x26   :  { %1207 = vmatpush.bf16.msra.mxu3 %v2061_v23  ;;  %v2091_v13 = vld [vmem:[#allocation6 + $0x1c0] sm:$0xff]  ;;  %v2122_v18 = vld [vmem:[#allocation6 + $0x2b8] sm:$0xff]  ;;  %v369_v20 = vpack.c.b16 %v353_v10, %v353_v10  ;;  %v367_v21 = vpack.c.b16 %v351_v11, %v351_v11  ;;  %v370_v22 = vpack.c.b16 %v354_v14, %v354_v14  ;;  %v368_v23 = vpack.c.b16 %v352_v15, %v352_v15  ;;  %v2136_v6 = vld [vmem:[#allocation6 + $0x328] sm:$0xff] }
  0x27   :  { %1169 = vmatpush.bf16.msra.mxu0 %v2036_v24  ;;  %v2130_v19 = vld [vmem:[#allocation6 + $0x2f8] sm:$0xff]  ;;  %v2105_v24 = vld [vmem:[#allocation6 + $0x230] sm:$0xff]  ;;  %v2103_v32 = vld [vmem:[#allocation6 + $0x220] sm:$0xff] }
  0x28   :  { %1182 = vmatpush.bf16.msra.mxu1 %v2044_v25  ;;  %v2113_v25 = vld [vmem:[#allocation6 + $0x270] sm:$0xff]  ;;  %v2111_v33 = vld [vmem:[#allocation6 + $0x260] sm:$0xff]  ;;  %v2102_v36 = vld [vmem:[#allocation6 + $0x218] sm:$0xff] }
  0x29   :  { %1195 = vmatpush.bf16.msra.mxu2 %v2052_v26  ;;  %v2121_v26 = vld [vmem:[#allocation6 + $0x2b0] sm:$0xff]  ;;  %v2110_v37 = vld [vmem:[#allocation6 + $0x258] sm:$0xff]  ;;  %v2144_v7 = vld [vmem:[#allocation6 + $0x368] sm:$0xff] }
  0x2a   :  { %1208 = vmatpush.bf16.msra.mxu3 %v2060_v27  ;;  %v2129_v27 = vld [vmem:[#allocation6 + $0x2f0] sm:$0xff]  ;;  %v2135_v10 = vld [vmem:[#allocation6 + $0x320] sm:$0xff]  ;;  %v2134_v14 = vld [vmem:[#allocation6 + $0x318] sm:$0xff] }
  0x2b   :  { %1170 = vmatpush.bf16.msra.mxu0 %v2035_v30  ;;  %v2120_v30 = vld [vmem:[#allocation6 + $0x2a8] sm:$0xff]  ;;  %v2143_v11 = vld [vmem:[#allocation6 + $0x360] sm:$0xff]  ;;  %v2142_v15 = vld [vmem:[#allocation6 + $0x358] sm:$0xff] }
  0x2c   :  { %1183 = vmatpush.bf16.msra.mxu1 %v2043_v31  ;;  %v2128_v31 = vld [vmem:[#allocation6 + $0x2e8] sm:$0xff] }
  0x2d   :  { %1196 = vmatpush.bf16.msra.mxu2 %v2051_v34  ;;  %v2119_v34 = vld [vmem:[#allocation6 + $0x2a0] sm:$0xff] }
  0x2e   :  { %1209 = vmatpush.bf16.msra.mxu3 %v2059_v35  ;;  %1171 = vmatmul.bf16.vlgmr.msra.gmra.mxu0 %v363_v43  ;;  %v2127_v35 = vld [vmem:[#allocation6 + $0x2e0] sm:$0xff]  ;;  %v2125_v43 = vld [vmem:[#allocation6 + $0x2d0] sm:$0xff] }
  0x2f   :  { %1215 = vmatpush.bf16.msrb.mxu0 %v2074_v38  ;;  %1184 = vmatmul.bf16.vlgmr.msra.gmra.mxu1 %v364_v45  ;;  %v2118_v38 = vld [vmem:[#allocation6 + $0x298] sm:$0xff]  ;;  %v2108_v45 = vld [vmem:[#allocation6 + $0x248] sm:$0xff] }
  0x30   :  { %1228 = vmatpush.bf16.msrb.mxu1 %v2082_v39  ;;  %1197 = vmatmul.bf16.vlgmr.msra.gmra.mxu2 %v365_v42  ;;  %v2126_v39 = vld [vmem:[#allocation6 + $0x2d8] sm:$0xff]  ;;  %v2117_v42 = vld [vmem:[#allocation6 + $0x290] sm:$0xff] }
  0x31   :  { %1241 = vmatpush.bf16.msrb.mxu2 %v2090_v40  ;;  %1210 = vmatmul.bf16.vlgmr.msra.gmra.mxu3 %v366_v44  ;;  %v2101_v40 = vld [vmem:[#allocation6 + $0x210] sm:$0xff]  ;;  %v2100_v44 = vld [vmem:[#allocation6 + $0x208] sm:$0xff] }
  0x32   :  { %1254 = vmatpush.bf16.msrb.mxu3 %v2098_v41  ;;  %v2109_v41 = vld [vmem:[#allocation6 + $0x250] sm:$0xff] }
  0x33   :  { %1216 = vmatpush.bf16.msrb.mxu0 %v2073_v46  ;;  %v2116_v46 = vld [vmem:[#allocation6 + $0x288] sm:$0xff] }
  0x34   :  { %1229 = vmatpush.bf16.msrb.mxu1 %v2081_v47  ;;  %v2124_v47 = vld [vmem:[#allocation6 + $0x2c8] sm:$0xff] }
  0x35   :  { %1242 = vmatpush.bf16.msrb.mxu2 %v2089_v48  ;;  %v75_v48 = vld [vmem:[#allocation3 + $0x20] sm:$0xff] }
  0x36   :  { %1255 = vmatpush.bf16.msrb.mxu3 %v2097_v49  ;;  %v76_v49 = vld [vmem:[#allocation3 + $0x28] sm:$0xff] }
  0x37   :  { %1217 = vmatpush.bf16.msrb.mxu0 %v2072_v50  ;;  %v2099_v50 = vld [vmem:[#allocation6 + $0x200] sm:$0xff] }
  0x38   :  { %1230 = vmatpush.bf16.msrb.mxu1 %v2080_v51  ;;  %v2107_v51 = vld [vmem:[#allocation6 + $0x240] sm:$0xff] }
  0x39   :  { %1243 = vmatpush.bf16.msrb.mxu2 %v2088_v52  ;;  %v355_v52 = vunpack.c.l.b16 %v75_v48 }
  0x3a   :  { %1256 = vmatpush.bf16.msrb.mxu3 %v2096_v53  ;;  %v357_v53 = vunpack.c.l.b16 %v76_v49 }
  0x3b   :  { %1218 = vmatpush.bf16.msrb.mxu0 %v2071_v54  ;;  %v2115_v54 = vld [vmem:[#allocation6 + $0x280] sm:$0xff] }
  0x3c   :  { %1231 = vmatpush.bf16.msrb.mxu1 %v2079_v55  ;;  %v2123_v55 = vld [vmem:[#allocation6 + $0x2c0] sm:$0xff] }
  0x3d   :  { %1244 = vmatpush.bf16.msrb.mxu2 %v2087_v56  ;;  %v356_v56 = vunpack.c.h.b16 %v75_v48 }
  0x3e   :  { %1257 = vmatpush.bf16.msrb.mxu3 %v2095_v57  ;;  %v358_v57 = vunpack.c.h.b16 %v76_v49 }
  0x3f   :  { %1219 = vmatpush.bf16.msrb.mxu0 %v2070_v58  ;;  %v2138_v58 = vld [vmem:[#allocation6 + $0x338] sm:$0xff] }
  0x40   :  { %1232 = vmatpush.bf16.msrb.mxu1 %v2078_v59  ;;  %v2146_v59 = vld [vmem:[#allocation6 + $0x378] sm:$0xff] }
  0x41   :  { %1245 = vmatpush.bf16.msrb.mxu2 %v2086_v60  ;;  %v2154_v60 = vld [vmem:[#allocation6 + $0x3b8] sm:$0xff] }
  0x42   :  { %1258 = vmatpush.bf16.msrb.mxu3 %v2094_v61  ;;  %v2162_v61 = vld [vmem:[#allocation6 + $0x3f8] sm:$0xff] }
  0x43   :  { %1220 = vmatpush.bf16.msrb.mxu0 %v2069_v62  ;;  %v371_v62 = vpack.c.b16 %v355_v52, %v355_v52 }
  0x44   :  { %1233 = vmatpush.bf16.msrb.mxu1 %v2077_v63  ;;  %v373_v63 = vpack.c.b16 %v357_v53, %v357_v53 }
  0x45   :  { %1246 = vmatpush.bf16.msrb.mxu2 %v2085_v0  ;;  %v372_v0 = vpack.c.b16 %v356_v56, %v356_v56 }
  0x46   :  { %1259 = vmatpush.bf16.msrb.mxu3 %v2093_v1  ;;  %v374_v1 = vpack.c.b16 %v358_v57, %v358_v57  ;;  %v2170_v57 = vld [vmem:[#allocation8 + $0x38] sm:$0xff] }
  0x47   :  { %1221 = vmatpush.bf16.msrb.mxu0 %v2068_v2  ;;  %v2137_v2 = vld [vmem:[#allocation6 + $0x330] sm:$0xff] }
  0x48   :  { %1234 = vmatpush.bf16.msrb.mxu1 %v2076_v3  ;;  %v2145_v3 = vld [vmem:[#allocation6 + $0x370] sm:$0xff] }
  0x49   :  { %1247 = vmatpush.bf16.msrb.mxu2 %v2084_v4  ;;  %v2153_v4 = vld [vmem:[#allocation6 + $0x3b0] sm:$0xff] }
  0x4a   :  { %1260 = vmatpush.bf16.msrb.mxu3 %v2092_v5  ;;  %v2161_v5 = vld [vmem:[#allocation6 + $0x3f0] sm:$0xff] }
  0x4b   :  { %1222 = vmatpush.bf16.msrb.mxu0 %v2067_v8  ;;  %v2152_v8 = vld [vmem:[#allocation6 + $0x3a8] sm:$0xff] }
  0x4c   :  { %1235 = vmatpush.bf16.msrb.mxu1 %v2075_v9  ;;  %v2160_v9 = vld [vmem:[#allocation6 + $0x3e8] sm:$0xff] }
  0x4d   :  { %1248 = vmatpush.bf16.msrb.mxu2 %v2083_v12  ;;  %v2151_v12 = vld [vmem:[#allocation6 + $0x3a0] sm:$0xff] }
  0x4e   :  { %1261 = vmatpush.bf16.msrb.mxu3 %v2091_v13  ;;  %1223 = vmatmul.bf16.vlgmr.msrb.gmra.mxu0 %v367_v21  ;;  %v2159_v13 = vld [vmem:[#allocation6 + $0x3e0] sm:$0xff]  ;;  %v2157_v21 = vld [vmem:[#allocation6 + $0x3d0] sm:$0xff] }
  0x4f   :  { %1267 = vmatpush.bf16.msra.mxu0 %v2106_v16  ;;  %1236 = vmatmul.bf16.vlgmr.msrb.gmra.mxu1 %v368_v23  ;;  %v2150_v16 = vld [vmem:[#allocation6 + $0x398] sm:$0xff]  ;;  %v2140_v23 = vld [vmem:[#allocation6 + $0x348] sm:$0xff] }
  0x50   :  { %1280 = vmatpush.bf16.msra.mxu1 %v2114_v17  ;;  %1249 = vmatmul.bf16.vlgmr.msrb.gmra.mxu2 %v369_v20  ;;  %v2158_v17 = vld [vmem:[#allocation6 + $0x3d8] sm:$0xff]  ;;  %v2149_v20 = vld [vmem:[#allocation6 + $0x390] sm:$0xff] }
  0x51   :  { %1293 = vmatpush.bf16.msra.mxu2 %v2122_v18  ;;  %1262 = vmatmul.bf16.vlgmr.msrb.gmra.mxu3 %v370_v22  ;;  %v2133_v18 = vld [vmem:[#allocation6 + $0x310] sm:$0xff]  ;;  %v2132_v22 = vld [vmem:[#allocation6 + $0x308] sm:$0xff] }
  0x52   :  { %1306 = vmatpush.bf16.msra.mxu3 %v2130_v19  ;;  %v2141_v19 = vld [vmem:[#allocation6 + $0x350] sm:$0xff] }
  0x53   :  { %1268 = vmatpush.bf16.msra.mxu0 %v2105_v24  ;;  %v77_v24 = vld [vmem:[#allocation3 + $0x30] sm:$0xff] }
  0x54   :  { %1281 = vmatpush.bf16.msra.mxu1 %v2113_v25  ;;  %v2148_v25 = vld [vmem:[#allocation6 + $0x388] sm:$0xff] }
  0x55   :  { %1294 = vmatpush.bf16.msra.mxu2 %v2121_v26  ;;  %v2156_v26 = vld [vmem:[#allocation6 + $0x3c8] sm:$0xff] }
  0x56   :  { %1307 = vmatpush.bf16.msra.mxu3 %v2129_v27  ;;  %v78_v27 = vld [vmem:[#allocation3 + $0x38] sm:$0xff] }
  0x57   :  { %1269 = vmatpush.bf16.msra.mxu0 %v2104_v28  ;;  %v359_v28 = vunpack.c.l.b16 %v77_v24 }
  0x58   :  { %1282 = vmatpush.bf16.msra.mxu1 %v2112_v29  ;;  %v360_v29 = vunpack.c.h.b16 %v77_v24 }
  0x59   :  { %1295 = vmatpush.bf16.msra.mxu2 %v2120_v30  ;;  %v2131_v30 = vld [vmem:[#allocation6 + $0x300] sm:$0xff] }
  0x5a   :  { %1308 = vmatpush.bf16.msra.mxu3 %v2128_v31  ;;  %v2139_v31 = vld [vmem:[#allocation6 + $0x340] sm:$0xff] }
  0x5b   :  { %1270 = vmatpush.bf16.msra.mxu0 %v2103_v32  ;;  %v361_v32 = vunpack.c.l.b16 %v78_v27 }
  0x5c   :  { %1283 = vmatpush.bf16.msra.mxu1 %v2111_v33  ;;  %v362_v33 = vunpack.c.h.b16 %v78_v27 }
  0x5d   :  { %1296 = vmatpush.bf16.msra.mxu2 %v2119_v34  ;;  %v2147_v34 = vld [vmem:[#allocation6 + $0x380] sm:$0xff] }
  0x5e   :  { %1309 = vmatpush.bf16.msra.mxu3 %v2127_v35  ;;  %v2155_v35 = vld [vmem:[#allocation6 + $0x3c0] sm:$0xff] }
  0x5f   :  { %1271 = vmatpush.bf16.msra.mxu0 %v2102_v36  ;;  %v375_v36 = vpack.c.b16 %v359_v28, %v359_v28 }
  0x60   :  { %1284 = vmatpush.bf16.msra.mxu1 %v2110_v37  ;;  %v376_v37 = vpack.c.b16 %v360_v29, %v360_v29 }
  0x61   :  { %1297 = vmatpush.bf16.msra.mxu2 %v2118_v38  ;;  %v377_v38 = vpack.c.b16 %v361_v32, %v361_v32 }
  0x62   :  { %1310 = vmatpush.bf16.msra.mxu3 %v2126_v39  ;;  %v378_v39 = vpack.c.b16 %v362_v33, %v362_v33 }
  0x63   :  { %1272 = vmatpush.bf16.msra.mxu0 %v2101_v40  ;;  %v2177_v40 = vld [vmem:[%s2341_s2] ss:$0 sm:$0xff] }
  0x64   :  { %1285 = vmatpush.bf16.msra.mxu1 %v2109_v41 }
  0x65   :  { %1298 = vmatpush.bf16.msra.mxu2 %v2117_v42 }
  0x66   :  { %1311 = vmatpush.bf16.msra.mxu3 %v2125_v43 }
  0x67   :  { %1273 = vmatpush.bf16.msra.mxu0 %v2100_v44 }
  0x68   :  { %1286 = vmatpush.bf16.msra.mxu1 %v2108_v45 }
  0x69   :  { %1299 = vmatpush.bf16.msra.mxu2 %v2116_v46 }
  0x6a   :  { %1312 = vmatpush.bf16.msra.mxu3 %v2124_v47 }
  0x6b   :  { %1274 = vmatpush.bf16.msra.mxu0 %v2099_v50 }
  0x6c   :  { %1287 = vmatpush.bf16.msra.mxu1 %v2107_v51 }
  0x6d   :  { %1300 = vmatpush.bf16.msra.mxu2 %v2115_v54 }
  0x6e   :  { %1313 = vmatpush.bf16.msra.mxu3 %v2123_v55  ;;  %1275 = vmatmul.bf16.vlgmr.msra.gmra.mxu0 %v371_v62 }
  0x6f   :  { %1319 = vmatpush.bf16.msrb.mxu0 %v2138_v58  ;;  %1288 = vmatmul.bf16.vlgmr.msra.gmra.mxu1 %v372_v0  ;;  %v2167_v0 = vld [vmem:[#allocation8 + $0x20] sm:$0xff] }
  0x70   :  { %1332 = vmatpush.bf16.msrb.mxu1 %v2146_v59  ;;  %1301 = vmatmul.bf16.vlgmr.msra.gmra.mxu2 %v373_v63 }
  0x71   :  { %1345 = vmatpush.bf16.msrb.mxu2 %v2154_v60  ;;  %1314 = vmatmul.bf16.vlgmr.msra.gmra.mxu3 %v374_v1  ;;  %v2169_v60 = vld [vmem:[#allocation8 + $0x30] sm:$0xff]  ;;  %v2166_v1 = vld [vmem:[#allocation8 + $0x18] sm:$0xff] }
  0x72   :  { %1358 = vmatpush.bf16.msrb.mxu3 %v2162_v61  ;;  %v2168_v61 = vld [vmem:[#allocation8 + $0x28] sm:$0xff] }
  0x73   :  { %1320 = vmatpush.bf16.msrb.mxu0 %v2137_v2 }
  0x74   :  { %1333 = vmatpush.bf16.msrb.mxu1 %v2145_v3  ;;  %v2165_v3 = vld [vmem:[#allocation8 + $0x10] sm:$0xff] }
  0x75   :  { %1346 = vmatpush.bf16.msrb.mxu2 %v2153_v4 }
  0x76   :  { %1359 = vmatpush.bf16.msrb.mxu3 %v2161_v5  ;;  %v2164_v5 = vld [vmem:[#allocation8 + $0x8] sm:$0xff] }
  0x77   :  { %1321 = vmatpush.bf16.msrb.mxu0 %v2136_v6 }
  0x78   :  { %1334 = vmatpush.bf16.msrb.mxu1 %v2144_v7 }
  0x79   :  { %1347 = vmatpush.bf16.msrb.mxu2 %v2152_v8 }
  0x7a   :  { %1360 = vmatpush.bf16.msrb.mxu3 %v2160_v9 }
  0x7b   :  { %1322 = vmatpush.bf16.msrb.mxu0 %v2135_v10  ;;  %v2163_v10 = vld [vmem:[#allocation8] sm:$0xff] }
  0x7c   :  { %1335 = vmatpush.bf16.msrb.mxu1 %v2143_v11 }
  0x7d   :  { %1348 = vmatpush.bf16.msrb.mxu2 %v2151_v12 }
  0x7e   :  { %1361 = vmatpush.bf16.msrb.mxu3 %v2159_v13 }
  0x7f   :  { %1323 = vmatpush.bf16.msrb.mxu0 %v2134_v14 }
  0x80   :  { %1336 = vmatpush.bf16.msrb.mxu1 %v2142_v15 }
  0x81   :  { %1349 = vmatpush.bf16.msrb.mxu2 %v2150_v16 }
  0x82   :  { %1362 = vmatpush.bf16.msrb.mxu3 %v2158_v17 }
  0x83   :  { %1324 = vmatpush.bf16.msrb.mxu0 %v2133_v18 }
  0x84   :  { %1337 = vmatpush.bf16.msrb.mxu1 %v2141_v19 }
  0x85   :  { %1350 = vmatpush.bf16.msrb.mxu2 %v2149_v20 }
  0x86   :  { %1363 = vmatpush.bf16.msrb.mxu3 %v2157_v21 }
  0x87   :  { %1325 = vmatpush.bf16.msrb.mxu0 %v2132_v22 }
  0x88   :  { %1338 = vmatpush.bf16.msrb.mxu1 %v2140_v23 }
  0x89   :  { %1351 = vmatpush.bf16.msrb.mxu2 %v2148_v25 }
  0x8a   :  { %1364 = vmatpush.bf16.msrb.mxu3 %v2156_v26 }
  0x8b   :  { %1326 = vmatpush.bf16.msrb.mxu0 %v2131_v30 }
  0x8c   :  { %1339 = vmatpush.bf16.msrb.mxu1 %v2139_v31 }
  0x8d   :  { %1352 = vmatpush.bf16.msrb.mxu2 %v2147_v34 }
  0x8e   :  { %1365 = vmatpush.bf16.msrb.mxu3 %v2155_v35  ;;  %1327 = vmatmul.bf16.vlgmr.msrb.gmra.mxu0 %v375_v36  ;;  %v2178_v35 = vld [vmem:[%s2343_s4] ss:$0 sm:$0xff] }
  0x8f   :  { %1340 = vmatmul.bf16.vlgmr.msrb.gmra.mxu1 %v376_v37  ;;  %1438 = vmatpush.bf16.msra.mxu0 %v2170_v57 }
  0x90   :  { %1353 = vmatmul.bf16.vlgmr.msrb.gmra.mxu2 %v377_v38 }
  0x91   :  { %1366 = vmatmul.bf16.vlgmr.msrb.gmra.mxu3 %v378_v39 }
  0x93   :  { %1439 = vmatpush.bf16.msra.mxu0 %v2169_v60 }
  0x97   :  { %1440 = vmatpush.bf16.msra.mxu0 %v2168_v61 }
  0x9b   :  { %1441 = vmatpush.bf16.msra.mxu0 %v2167_v0 }
  0x9f   :  { %1442 = vmatpush.bf16.msra.mxu0 %v2166_v1 }
  0xa3   :  { %1443 = vmatpush.bf16.msra.mxu0 %v2165_v3 }
  0xa7   :  { %1444 = vmatpush.bf16.msra.mxu0 %v2164_v5 }
  0xab   :  { %v1172_v41 = vpop.f32.mrf.mxu0  ;;  %1445 = vmatpush.bf16.msra.mxu0 %v2163_v10 }
  0xac   :  { %v1173_v42 = vadd.f32 %v2177_v40, %v1172_v41  ;;  %v1185_v43 = vpop.f32.mrf.mxu1 }
  0xae   :  { %v1186_v44 = vadd.f32 %v1185_v43, %v1173_v42 }
  0xb3   :  { %v1198_v45 = vpop.f32.mrf.mxu2  ;;  %v1174_v48 = vpop.f32.mrf.mxu0 }
  0xb4   :  { %v1199_v46 = vadd.f32 %v1198_v45, %v1186_v44  ;;  %v1211_v47 = vpop.f32.mrf.mxu3  ;;  %v1187_v50 = vpop.f32.mrf.mxu1 }
  0xb6   :  { %v1212_v49 = vadd.f32 %v1211_v47, %v1199_v46 }
  0xbb   :  { %v1200_v51 = vpop.f32.mrf.mxu2 }
  0xbc   :  { %v1213_v52 = vpop.f32.mrf.mxu3 }
  0xcb   :  { %v1224_v53 = vpop.f32.mrf.mxu0 }
  0xcc   :  { %v1237_v54 = vpop.f32.mrf.mxu1  ;;  %v1225_v6 = vadd.f32 %v1224_v53, %v1212_v49 }
  0xce   :  { %v1238_v11 = vadd.f32 %v1237_v54, %v1225_v6 }
  0xd3   :  { %v1250_v55 = vpop.f32.mrf.mxu2  ;;  %v1226_v58 = vpop.f32.mrf.mxu0 }
  0xd4   :  { %v1263_v56 = vpop.f32.mrf.mxu3  ;;  %v1239_v59 = vpop.f32.mrf.mxu1  ;;  %v1251_v13 = vadd.f32 %v1250_v55, %v1238_v11 }
  0xd6   :  { %v1264_v16 = vadd.f32 %v1263_v56, %v1251_v13 }
  0xdb   :  { %v1252_v62 = vpop.f32.mrf.mxu2 }
  0xdc   :  { %v1265_v63 = vpop.f32.mrf.mxu3 }
  0xeb   :  { %v1276_v2 = vpop.f32.mrf.mxu0 }
  0xec   :  { %v1289_v4 = vpop.f32.mrf.mxu1  ;;  %v1277_v17 = vadd.f32 %v1276_v2, %v1264_v16 }
  0xee   :  { %v1290_v18 = vadd.f32 %v1289_v4, %v1277_v17 }
  0xf3   :  { %v1302_v7 = vpop.f32.mrf.mxu2  ;;  %v1278_v9 = vpop.f32.mrf.mxu0 }
  0xf4   :  { %v1315_v8 = vpop.f32.mrf.mxu3  ;;  %v1291_v12 = vpop.f32.mrf.mxu1  ;;  %v1303_v19 = vadd.f32 %v1302_v7, %v1290_v18 }
  0xf6   :  { %v1316_v20 = vadd.f32 %v1315_v8, %v1303_v19 }
  0xfb   :  { %v1304_v14 = vpop.f32.mrf.mxu2 }
  0xfc   :  { %v1317_v15 = vpop.f32.mrf.mxu3 }
 0x10b   :  { %v1328_v21 = vpop.f32.mrf.mxu0 }
 0x10c   :  { %v1341_v22 = vpop.f32.mrf.mxu1  ;;  %v1329_v23 = vadd.f32 %v1328_v21, %v1316_v20 }
 0x10e   :  { %v1342_v24 = vadd.f32 %v1341_v22, %v1329_v23 }
 0x113   :  { %v1354_v25 = vpop.f32.mrf.mxu2  ;;  %v1330_v28 = vpop.f32.mrf.mxu0 }
 0x114   :  { %v1367_v26 = vpop.f32.mrf.mxu3  ;;  %v1355_v27 = vadd.f32 %v1354_v25, %v1342_v24  ;;  %v1343_v29 = vpop.f32.mrf.mxu1 }
 0x116   :  { %v1368_v30 = vadd.f32 %v1367_v26, %v1355_v27 }
 0x118   :  { %v1371_v31 = vmax.f32 %v1368_v30, 0.0 }
 0x11a   :  { %v1389_v32 = vpack.c.bf16 %v1371_v31, %v1371_v31 }
 0x11b   :  { %v1356_v33 = vpop.f32.mrf.mxu2 }
 0x11c   :  { %v1369_v34 = vpop.f32.mrf.mxu3  ;;  %1446 = vmatmul.bf16.vlgmr.msra.gmra.mxu0 %v1389_v32 }
 0x199   :  { %v1447_v36 = vpop.f32.mrf.mxu0 }
 0x19a   :  { %v1461_v37 = vadd.f32 %v2178_v35, %v1447_v36 }
 0x19c   :  { %1462 = vmax.xlane.f32.xlu0 %v1461_v37 }
 0x1a1   :  { %v1449_v38 = vpop.f32.mrf.mxu0 }
 0x20f   :  { %v1463_v39 = vpop.xlane.xlu0 %1462 }
 0x210   :  { %v1464_v40 = vsub.f32 %v1461_v37, %v1463_v39 }
 0x212   :  { %v1465_v41 = vmul.f32 1.442695, %v1464_v40 }
 0x214   :  { %2179 = vpow2.f32 %v1465_v41 }
 0x21a   :  { %v2180_v42 = vpop.eup %2179 }
 0x21b   :  { %1467 = vadd.xlane.f32.xlu0 %v2180_v42 }
 0x28e   :  { %v1468_v43 = vpop.xlane.xlu0 %1467 }
 0x28f   :  { %2181 = vlog2.f32 %v1468_v43 }
 0x295   :  { %v2182_v44 = vpop.eup %2181 }
 0x296   :  { %v1470_v45 = vmul.f32 0.6931472, %v2182_v44 }
 0x298   :  { %v1471_v46 = vsub.f32 %v1464_v40, %v1470_v45 }
 0x29a   :  { %1472 = vst [vmem:[#allocation9] sm:$0xff] %v1471_v46 }
 0x29b   :  { %1483 = dma.vmem_to_hbm [thread:$0]  %s1479_s11, 128, %s1481_s14, [#allocation5]  }
 0x29c   :  { %2283 = dma.done.wait [#allocation5], 128  }
 0x29d   :  { %2284 = vsyncadd [#allocation5], 4294967168 }
 0x29e   :  { %1488 = vsyncpa [#allocation4], 1 }
 0x29f   :  { %1489 = vsyncpa [#allocation7], 1 }
 0x2a0   :  { %1490 = vsyncpa [#allocation5], 1 }

</bundles_post_ra>
